<compile_context>
chip_gen: v5e
topology: v5e:2x2
jax: 0.10.0
libtpu: 0.0.40
codegen_flags: <defaults>
</compile_context>

<pallas_src>
import functools

import jax
import jax.numpy as jnp
from jax.experimental import pallas as pl
from jax.experimental.pallas import tpu as pltpu


def _round_up(a, b):
    return (a + b - 1) // b * b


def _conv1_lrelu_conv2(x, w1, b1_ref, w2_ref):
    """conv1 (C FMAs on VPU) + bias + LeakyReLU(0.2), then conv2 on the MXU.

    x: (C, TM), w1: (ndf, C), b1: (ndf, 1), w2: (2*ndf, ndf) -> (2*ndf, TM).
    """
    c_in = x.shape[0]
    # conv1: K = C is tiny (e.g. 4) -> broadcast FMAs, keep the MXU free.
    h1 = b1_ref[...] + w1[:, 0:1] * x[0:1, :]
    for c in range(1, c_in):
        h1 = h1 + w1[:, c:c + 1] * x[c:c + 1, :]
    h1 = jnp.where(h1 >= 0, h1, 0.2 * h1)                     # LeakyReLU(0.2)
    # conv2 (no bias): (2*ndf, ndf) @ (ndf, TM) on the MXU, f32 accumulate.
    return jnp.dot(w2_ref[...], h1, preferred_element_type=jnp.float32)


def _stats_kernel(x_ref, w1_ref, b1_ref, w2_ref, mean_ref, rstd_ref, *, m_total):
    """Pass 1: accumulate per-channel sum / sumsq of h2; finalize mean & rstd."""
    i = pl.program_id(0)
    nt = pl.num_programs(0)
    tm = x_ref.shape[1]

    @pl.when(i == 0)
    def _():
        mean_ref[...] = jnp.zeros_like(mean_ref)   # doubles as sum accumulator
        rstd_ref[...] = jnp.zeros_like(rstd_ref)   # doubles as sumsq accumulator

    h2 = _conv1_lrelu_conv2(x_ref[...], w1_ref[...], b1_ref, w2_ref)

    # Mask padded pixel columns so they do not pollute the batch statistics.
    col = jax.lax.broadcasted_iota(jnp.int32, (1, tm), 1) + i * tm
    h2 = jnp.where(col < m_total, h2, 0.0)

    mean_ref[...] += jnp.sum(h2, axis=1, keepdims=True)
    rstd_ref[...] += jnp.sum(h2 * h2, axis=1, keepdims=True)

    @pl.when(i == nt - 1)
    def _():
        inv_m = 1.0 / m_total
        mu = mean_ref[...] * inv_m
        var = rstd_ref[...] * inv_m - mu * mu      # biased variance (BN train mode)
        mean_ref[...] = mu
        rstd_ref[...] = jax.lax.rsqrt(var + 1e-5)


def _apply_kernel(x_ref, w1_ref, b1_ref, w2_ref, mean_ref, rstd_ref,
                  gamma_ref, beta_ref, w3_ref, o_ref):
    """Pass 2: recompute h2, apply BN + LeakyReLU + conv3, lane-dense output."""
    h2 = _conv1_lrelu_conv2(x_ref[...], w1_ref[...], b1_ref, w2_ref)

    # BatchNorm with precomputed batch stats, fused affine.
    scale = rstd_ref[...] * gamma_ref[...]                     # (2*ndf, 1)
    shift = beta_ref[...] - mean_ref[...] * scale
    h2n = h2 * scale + shift
    h2n = jnp.where(h2n >= 0, h2n, 0.2 * h2n)                  # LeakyReLU(0.2)

    # conv3 (2*ndf -> 1, no bias): VPU multiply + sublane reduce keeps the
    # per-pixel scalar on lanes -> lane-dense (1, TM) store.
    o_ref[...] = jnp.sum(h2n * w3_ref[...], axis=0, keepdims=True)


def pixel_discriminator(x_nchw, params, *, tile_m=2048):
    """x_nchw: (N, C, H, W) float32. Returns (N, 1, H, W)."""
    w1, b1, w2, gamma, beta, w3 = params
    N, C, H, W = x_nchw.shape
    M = N * H * W
    ndf2 = w2.shape[0]

    # Tile the pixel axis; pad M up to a multiple of the tile (lane-aligned).
    tm = min(_round_up(tile_m, 128), _round_up(M, 128))
    m_pad = _round_up(M, tm)
    num_tiles = m_pad // tm

    # Channel-planar layout: (N, C, H, W) -> (C, M) with M row-major over (N, H, W).
    x_cm = jnp.transpose(x_nchw, (1, 0, 2, 3)).reshape(C, M)
    if m_pad != M:
        x_cm = jnp.pad(x_cm, ((0, 0), (0, m_pad - M)))

    def full(arr_shape):
        # Resident-parameter spec: full array, constant block index.
        return pl.BlockSpec(arr_shape, lambda i: (0, 0))

    x_spec = pl.BlockSpec((C, tm), lambda i: (0, i))

    # ---- Pass 1: batch statistics (reduction axis -> "arbitrary") ----------
    mean, rstd = pl.pallas_call(
        functools.partial(_stats_kernel, m_total=M),
        out_shape=(jax.ShapeDtypeStruct((ndf2, 1), jnp.float32),
                   jax.ShapeDtypeStruct((ndf2, 1), jnp.float32)),
        grid=(num_tiles,),
        in_specs=[x_spec, full(w1.shape), full(b1.shape), full(w2.shape)],
        out_specs=(full((ndf2, 1)), full((ndf2, 1))),
        compiler_params=pltpu.CompilerParams(
            dimension_semantics=("arbitrary",),
            vmem_limit_bytes=32 * 1024 * 1024),
    )(x_cm, w1, b1, w2)

    # ---- Pass 2: normalize + apply (independent tiles -> "parallel") -------
    out_rows = pl.pallas_call(
        _apply_kernel,
        out_shape=jax.ShapeDtypeStruct((1, m_pad), jnp.float32),
        grid=(num_tiles,),
        in_specs=[x_spec, full(w1.shape), full(b1.shape), full(w2.shape),
                  full(mean.shape), full(rstd.shape),
                  full(gamma.shape), full(beta.shape), full(w3.shape)],
        out_specs=pl.BlockSpec((1, tm), lambda i: (0, i)),
        compiler_params=pltpu.CompilerParams(
            dimension_semantics=("parallel",),
            vmem_limit_bytes=32 * 1024 * 1024),
    )(x_cm, w1, b1, w2, mean, rstd, gamma, beta, w3)

    # (1, m_pad) -> drop padding -> (N, 1, H, W) (pure reshape, no transpose).
    return out_rows[0, :M].reshape(N, 1, H, W)


def make_params(key, input_nc, ndf):
    """Deterministic synthetic parameters in channel-planar layout.

    PyTorch correspondence:
      w1 = conv1.weight.squeeze(-1,-2)            (ndf,   input_nc)
      b1 = conv1.bias[:, None]                    (ndf,   1)
      w2 = conv2.weight.squeeze(-1,-2)            (2*ndf, ndf)      (no bias)
      gamma/beta = bn.weight/bias[:, None]        (2*ndf, 1)
      w3 = conv3.weight.squeeze(-1,-2).T          (2*ndf, 1)        (no bias)
    """
    k1, k2, k3, k4 = jax.random.split(key, 4)
    w1 = jax.random.normal(k1, (ndf, input_nc), jnp.float32) * 0.1
    b1 = jax.random.normal(k2, (ndf, 1), jnp.float32) * 0.1
    w2 = jax.random.normal(k3, (2 * ndf, ndf), jnp.float32) * 0.1
    gamma = jnp.linspace(0.8, 1.2, 2 * ndf, dtype=jnp.float32).reshape(2 * ndf, 1)
    beta = jnp.linspace(-0.1, 0.1, 2 * ndf, dtype=jnp.float32).reshape(2 * ndf, 1)
    w3 = jax.random.normal(k4, (2 * ndf, 1), jnp.float32) * 0.1
    return (w1, b1, w2, gamma, beta, w3)


def _reference(x_nchw, params):
    """Pure-JAX reference of the same forward (pixels-on-rows formulation)."""
    w1, b1, w2, gamma, beta, w3 = params
    N, C, H, W = x_nchw.shape
    x = jnp.transpose(x_nchw, (0, 2, 3, 1)).reshape(-1, C)       # (M, C)
    h1 = x @ w1.T + b1.T
    h1 = jnp.where(h1 >= 0, h1, 0.2 * h1)
    h2 = h1 @ w2.T
    mean = jnp.mean(h2, axis=0, keepdims=True)
    var = jnp.mean((h2 - mean) ** 2, axis=0, keepdims=True)
    h2n = (h2 - mean) / jnp.sqrt(var + 1e-5) * gamma.T + beta.T
    h2n = jnp.where(h2n >= 0, h2n, 0.2 * h2n)
    out = h2n @ w3                                               # (M, 1)
    return jnp.transpose(out.reshape(N, H, W, 1), (0, 3, 1, 2))


if __name__ == "__main__":
    key = jax.random.PRNGKey(0)
    kx, kp = jax.random.split(key)

    # Small shapes: batch=2, input_nc=4, spatial=16x16, ndf=64
    N, input_nc, H, W = 2, 4, 16, 16
    ndf = 64

    x = jax.random.normal(kx, (N, input_nc, H, W), jnp.float32)
    params = make_params(kp, input_nc, ndf)

    out = jax.block_until_ready(pixel_discriminator(x, params))
    assert out.shape == (N, 1, H, W), out.shape

    ref = _reference(x, params)
    assert jnp.allclose(out, ref, atol=1e-4, rtol=1e-4), \
        float(jnp.max(jnp.abs(out - ref)))

    print("KERNEL_OK")
</pallas_src>

<mosaic_0001>
module attributes {stable_mosaic.version = 11 : i64} {
  func.func @_stats_kernel(%arg0: i32, %arg1: memref<4x512xf32, #tpu.memory_space<vmem>>, %arg2: memref<64x4xf32, #tpu.memory_space<vmem>>, %arg3: memref<64x1xf32, #tpu.memory_space<vmem>>, %arg4: memref<128x64xf32, #tpu.memory_space<vmem>>, %arg5: memref<128x1xf32, #tpu.memory_space<vmem>>, %arg6: memref<128x1xf32, #tpu.memory_space<vmem>>) attributes {dimension_semantics = [#tpu.dimension_semantics<arbitrary>], iteration_bounds = array<i64: 1>, scalar_prefetch = 0 : i64, scratch_operands = 0 : i64, tpu.core_type = #tpu.core_type<tc>, window_params = [{transform_indices = @transform_0, window_bounds = array<i64: 4, 512>}, {pipeline_mode = #tpu.pipeline_mode<synchronous>, transform_indices = @transform_1, window_bounds = array<i64: 64, 4>}, {pipeline_mode = #tpu.pipeline_mode<synchronous>, transform_indices = @transform_2, window_bounds = array<i64: 64, 1>}, {pipeline_mode = #tpu.pipeline_mode<synchronous>, transform_indices = @transform_3, window_bounds = array<i64: 128, 64>}, {pipeline_mode = #tpu.pipeline_mode<synchronous>, transform_indices = @transform_4, window_bounds = array<i64: 128, 1>}, {pipeline_mode = #tpu.pipeline_mode<synchronous>, transform_indices = @transform_5, window_bounds = array<i64: 128, 1>}]} {
    %c0_i32 = arith.constant 0 : i32
    %0 = arith.cmpi eq, %arg0, %c0_i32 : i32
    %1 = arith.extui %0 : i1 to i32
    %c0_i32_0 = arith.constant 0 : i32
    %2 = arith.cmpi ne, %1, %c0_i32_0 : i32
    scf.if %2 {
      %cst_24 = arith.constant 0.000000e+00 : f32
      %62 = vector.broadcast %cst_24 : f32 to vector<128x1xf32>
      %c0_25 = arith.constant 0 : index
      %c0_26 = arith.constant 0 : index
      %63 = vector.load %arg5[%c0_25, %c0_26] : memref<128x1xf32, #tpu.memory_space<vmem>>, vector<128x1xf32>
      tpu.vector_store %arg5[%c0_25, %c0_26], %62 {strides = array<i32>} : memref<128x1xf32, #tpu.memory_space<vmem>>, vector<128x1xf32>,
      %cst_27 = arith.constant 0.000000e+00 : f32
      %64 = vector.broadcast %cst_27 : f32 to vector<128x1xf32>
      %c0_28 = arith.constant 0 : index
      %c0_29 = arith.constant 0 : index
      %65 = vector.load %arg6[%c0_28, %c0_29] : memref<128x1xf32, #tpu.memory_space<vmem>>, vector<128x1xf32>
      tpu.vector_store %arg6[%c0_28, %c0_29], %64 {strides = array<i32>} : memref<128x1xf32, #tpu.memory_space<vmem>>, vector<128x1xf32>,
    } else {
    }
    %c0 = arith.constant 0 : index
    %c0_1 = arith.constant 0 : index
    %3 = vector.load %arg1[%c0, %c0_1] : memref<4x512xf32, #tpu.memory_space<vmem>>, vector<4x512xf32>
    %c0_2 = arith.constant 0 : index
    %c0_3 = arith.constant 0 : index
    %4 = vector.load %arg2[%c0_2, %c0_3] : memref<64x4xf32, #tpu.memory_space<vmem>>, vector<64x4xf32>
    %c0_4 = arith.constant 0 : index
    %c0_5 = arith.constant 0 : index
    %5 = vector.load %arg3[%c0_4, %c0_5] : memref<64x1xf32, #tpu.memory_space<vmem>>, vector<64x1xf32>
    %6 = vector.extract_strided_slice %4 {offsets = [0, 0], sizes = [64, 1], strides = [1, 1]} : vector<64x4xf32> to vector<64x1xf32>
    %7 = vector.extract_strided_slice %3 {offsets = [0, 0], sizes = [1, 512], strides = [1, 1]} : vector<4x512xf32> to vector<1x512xf32>
    %8 = vector.broadcast %6 : vector<64x1xf32> to vector<64x512xf32>
    %9 = vector.broadcast %7 : vector<1x512xf32> to vector<64x512xf32>
    %10 = arith.mulf %8, %9 : vector<64x512xf32>
    %11 = vector.broadcast %5 : vector<64x1xf32> to vector<64x512xf32>
    %12 = arith.addf %11, %10 : vector<64x512xf32>
    %13 = vector.extract_strided_slice %4 {offsets = [0, 1], sizes = [64, 1], strides = [1, 1]} : vector<64x4xf32> to vector<64x1xf32>
    %14 = vector.extract_strided_slice %3 {offsets = [1, 0], sizes = [1, 512], strides = [1, 1]} : vector<4x512xf32> to vector<1x512xf32>
    %15 = vector.broadcast %13 : vector<64x1xf32> to vector<64x512xf32>
    %16 = vector.broadcast %14 : vector<1x512xf32> to vector<64x512xf32>
    %17 = arith.mulf %15, %16 : vector<64x512xf32>
    %18 = arith.addf %12, %17 : vector<64x512xf32>
    %19 = vector.extract_strided_slice %4 {offsets = [0, 2], sizes = [64, 1], strides = [1, 1]} : vector<64x4xf32> to vector<64x1xf32>
    %20 = vector.extract_strided_slice %3 {offsets = [2, 0], sizes = [1, 512], strides = [1, 1]} : vector<4x512xf32> to vector<1x512xf32>
    %21 = vector.broadcast %19 : vector<64x1xf32> to vector<64x512xf32>
    %22 = vector.broadcast %20 : vector<1x512xf32> to vector<64x512xf32>
    %23 = arith.mulf %21, %22 : vector<64x512xf32>
    %24 = arith.addf %18, %23 : vector<64x512xf32>
    %25 = vector.extract_strided_slice %4 {offsets = [0, 3], sizes = [64, 1], strides = [1, 1]} : vector<64x4xf32> to vector<64x1xf32>
    %26 = vector.extract_strided_slice %3 {offsets = [3, 0], sizes = [1, 512], strides = [1, 1]} : vector<4x512xf32> to vector<1x512xf32>
    %27 = vector.broadcast %25 : vector<64x1xf32> to vector<64x512xf32>
    %28 = vector.broadcast %26 : vector<1x512xf32> to vector<64x512xf32>
    %29 = arith.mulf %27, %28 : vector<64x512xf32>
    %30 = arith.addf %24, %29 : vector<64x512xf32>
    %cst = arith.constant 0.000000e+00 : f32
    %31 = vector.broadcast %cst : f32 to vector<64x512xf32>
    %32 = arith.cmpf oge, %30, %31 : vector<64x512xf32>
    %cst_6 = arith.constant 2.000000e-01 : f32
    %33 = vector.broadcast %cst_6 : f32 to vector<64x512xf32>
    %34 = arith.mulf %33, %30 : vector<64x512xf32>
    %35 = arith.select %32, %30, %34 : vector<64x512xi1>, vector<64x512xf32>
    %c0_7 = arith.constant 0 : index
    %c0_8 = arith.constant 0 : index
    %36 = vector.load %arg4[%c0_7, %c0_8] : memref<128x64xf32, #tpu.memory_space<vmem>>, vector<128x64xf32>
    %cst_9 = arith.constant dense<0.000000e+00> : vector<128x512xf32>
    %37 = tpu.matmul %36, %35, %cst_9 {dimension_numbers = #tpu.dot_dimension_numbers<[1], [0], [0], [1], [0, 0, 1, 1], [], []>} : vector<128x64xf32>, vector<64x512xf32>, vector<128x512xf32> -> vector<128x512xf32>
    %38 = tpu.iota {dimensions = array<i32: 1>} : vector<1x512xi32>
    %c512_i32 = arith.constant 512 : i32
    %39 = arith.muli %arg0, %c512_i32 : i32
    %40 = vector.broadcast %39 : i32 to vector<1x512xi32>
    %41 = arith.addi %38, %40 : vector<1x512xi32>
    %c512_i32_10 = arith.constant 512 : i32
    %42 = vector.broadcast %c512_i32_10 : i32 to vector<1x512xi32>
    %43 = arith.cmpi slt, %41, %42 : vector<1x512xi32>
    %cst_11 = arith.constant 0.000000e+00 : f32
    %44 = vector.shape_cast %43 : vector<1x512xi1> to vector<1x512xi1>
    %45 = vector.broadcast %44 : vector<1x512xi1> to vector<128x512xi1>
    %46 = vector.broadcast %cst_11 : f32 to vector<128x512xf32>
    %47 = arith.select %45, %37, %46 : vector<128x512xi1>, vector<128x512xf32>
    %c0_12 = arith.constant 0 : index
    %c0_13 = arith.constant 0 : index
    %48 = vector.load %arg5[%c0_12, %c0_13] : memref<128x1xf32, #tpu.memory_space<vmem>>, vector<128x1xf32>
    %cst_14 = arith.constant dense<0.000000e+00> : vector<128xf32>
    %49 = vector.multi_reduction <add>, %47, %cst_14 [1] : vector<128x512xf32> to vector<128xf32>
    %50 = vector.shape_cast %49 : vector<128xf32> to vector<128x1xf32>
    %51 = arith.addf %48, %50 : vector<128x1xf32>
    %c0_15 = arith.constant 0 : index
    %c0_16 = arith.constant 0 : index
    %52 = vector.load %arg5[%c0_15, %c0_16] : memref<128x1xf32, #tpu.memory_space<vmem>>, vector<128x1xf32>
    tpu.vector_store %arg5[%c0_15, %c0_16], %51 {strides = array<i32>} : memref<128x1xf32, #tpu.memory_space<vmem>>, vector<128x1xf32>,
    %c0_17 = arith.constant 0 : index
    %c0_18 = arith.constant 0 : index
    %53 = vector.load %arg6[%c0_17, %c0_18] : memref<128x1xf32, #tpu.memory_space<vmem>>, vector<128x1xf32>
    %54 = arith.mulf %47, %47 : vector<128x512xf32>
    %cst_19 = arith.constant dense<0.000000e+00> : vector<128xf32>
    %55 = vector.multi_reduction <add>, %54, %cst_19 [1] : vector<128x512xf32> to vector<128xf32>
    %56 = vector.shape_cast %55 : vector<128xf32> to vector<128x1xf32>
    %57 = arith.addf %53, %56 : vector<128x1xf32>
    %c0_20 = arith.constant 0 : index
    %c0_21 = arith.constant 0 : index
    %58 = vector.load %arg6[%c0_20, %c0_21] : memref<128x1xf32, #tpu.memory_space<vmem>>, vector<128x1xf32>
    tpu.vector_store %arg6[%c0_20, %c0_21], %57 {strides = array<i32>} : memref<128x1xf32, #tpu.memory_space<vmem>>, vector<128x1xf32>,
    %c0_i32_22 = arith.constant 0 : i32
    %59 = arith.cmpi eq, %arg0, %c0_i32_22 : i32
    %60 = arith.extui %59 : i1 to i32
    %c0_i32_23 = arith.constant 0 : i32
    %61 = arith.cmpi ne, %60, %c0_i32_23 : i32
    scf.if %61 {
      %c0_24 = arith.constant 0 : index
      %c0_25 = arith.constant 0 : index
      %62 = vector.load %arg5[%c0_24, %c0_25] : memref<128x1xf32, #tpu.memory_space<vmem>>, vector<128x1xf32>
      %cst_26 = arith.constant 0.001953125 : f32
      %63 = vector.broadcast %cst_26 : f32 to vector<128x1xf32>
      %64 = arith.mulf %62, %63 : vector<128x1xf32>
      %c0_27 = arith.constant 0 : index
      %c0_28 = arith.constant 0 : index
      %65 = vector.load %arg6[%c0_27, %c0_28] : memref<128x1xf32, #tpu.memory_space<vmem>>, vector<128x1xf32>
      %cst_29 = arith.constant 0.001953125 : f32
      %66 = vector.broadcast %cst_29 : f32 to vector<128x1xf32>
      %67 = arith.mulf %65, %66 : vector<128x1xf32>
      %68 = arith.mulf %64, %64 : vector<128x1xf32>
      %69 = arith.subf %67, %68 : vector<128x1xf32>
      %c0_30 = arith.constant 0 : index
      %c0_31 = arith.constant 0 : index
      %70 = vector.load %arg5[%c0_30, %c0_31] : memref<128x1xf32, #tpu.memory_space<vmem>>, vector<128x1xf32>
      tpu.vector_store %arg5[%c0_30, %c0_31], %64 {strides = array<i32>} : memref<128x1xf32, #tpu.memory_space<vmem>>, vector<128x1xf32>,
      %cst_32 = arith.constant 9.99999974E-6 : f32
      %71 = vector.broadcast %cst_32 : f32 to vector<128x1xf32>
      %72 = arith.addf %69, %71 : vector<128x1xf32>
      %73 = math.rsqrt %72 : vector<128x1xf32>
      %c0_33 = arith.constant 0 : index
      %c0_34 = arith.constant 0 : index
      %74 = vector.load %arg6[%c0_33, %c0_34] : memref<128x1xf32, #tpu.memory_space<vmem>>, vector<128x1xf32>
      tpu.vector_store %arg6[%c0_33, %c0_34], %73 {strides = array<i32>} : memref<128x1xf32, #tpu.memory_space<vmem>>, vector<128x1xf32>,
    } else {
    }
    return
  }
  func.func @transform_0(%arg0: i32) -> (i32, i32) {
    %c0_i32 = arith.constant 0 : i32
    %c0_i32_0 = arith.constant 0 : i32
    return %c0_i32, %arg0 : i32, i32
  }
  func.func @transform_1(%arg0: i32) -> (i32, i32) {
    %c0_i32 = arith.constant 0 : i32
    %c0_i32_0 = arith.constant 0 : i32
    %c0_i32_1 = arith.constant 0 : i32
    return %c0_i32, %c0_i32_0 : i32, i32
  }
  func.func @transform_2(%arg0: i32) -> (i32, i32) {
    %c0_i32 = arith.constant 0 : i32
    %c0_i32_0 = arith.constant 0 : i32
    %c0_i32_1 = arith.constant 0 : i32
    return %c0_i32, %c0_i32_0 : i32, i32
  }
  func.func @transform_3(%arg0: i32) -> (i32, i32) {
    %c0_i32 = arith.constant 0 : i32
    %c0_i32_0 = arith.constant 0 : i32
    %c0_i32_1 = arith.constant 0 : i32
    return %c0_i32, %c0_i32_0 : i32, i32
  }
  func.func @transform_4(%arg0: i32) -> (i32, i32) {
    %c0_i32 = arith.constant 0 : i32
    %c0_i32_0 = arith.constant 0 : i32
    %c0_i32_1 = arith.constant 0 : i32
    return %c0_i32, %c0_i32_0 : i32, i32
  }
  func.func @transform_5(%arg0: i32) -> (i32, i32) {
    %c0_i32 = arith.constant 0 : i32
    %c0_i32_0 = arith.constant 0 : i32
    %c0_i32_1 = arith.constant 0 : i32
    return %c0_i32, %c0_i32_0 : i32, i32
  }
}

</mosaic_0001>

<bundles_post_ra>
// kernel: tpu_custom_call.1
= control target key start
LH: loop header
LB: loop body
LE: loop exit
PB: predicated region body
PF: predicated region fallthrough
CT: control target
= control target key end

     0   :  { %v1833_v0 = vmov 1   ;;  %v1834_v1 = vmov 0   ;;  %v1835_v8 = vmov 2   ;;  %v1836_v13 = vmov 3   ;;  %s3040_s2 = inlined_call_operand.vmem [shape: f32[64,1], index: 2, kind: input, shape index: {}]   ;;  %s3041_s1 = inlined_call_operand.vmem [shape: f32[64,4], index: 1, kind: input, shape index: {}]   ;;  %s3042_s0 = inlined_call_operand.vmem [shape: f32[4,512], index: 0, kind: input, shape index: {}]   ;;  %s3043_s3 = inlined_call_operand.vmem [shape: f32[128,64], index: 3, kind: input, shape index: {}]   ;;  %s3044_s4 = inlined_call_operand.vmem [shape: f32[128,1], index: 4, kind: output, shape index: {0}]   ;;  %s3045_s5 = inlined_call_operand.vmem [shape: f32[128,1], index: 5, kind: output, shape index: {1}]  }
   0x1   :  { %1772 = vset.pattern.permute.xlu0 %v1833_v0  ;;  %1769 = vset.pattern.permute.xlu1 %v1834_v1  ;;  %v73_v2 = vld [vmem:[%s3040_s2 + $0x38] sm:$0xff]  ;;  %v64_v3 = vld [vmem:[%s3041_s1 + $0x30] sm:$0xff]  ;;  %v63_v4 = vld [vmem:[%s3041_s1 + $0x28] sm:$0xff] }
   0x2   :  { %197 = vperm.xlu1 %1769, %v73_v2   ;;  %257 = vperm.xlu0 %1772, %v64_v3   ;;  %v65_v5 = vld [vmem:[%s3041_s1 + $0x38] sm:$0xff]  ;;  %v72_v6 = vld [vmem:[%s3040_s2 + $0x30] sm:$0xff]  ;;  %v62_v7 = vld [vmem:[%s3041_s1 + $0x20] sm:$0xff] }
   0x3   :  { %1771 = vset.pattern.permute.xlu2 %v1834_v1  ;;  %v69_v9 = vld [vmem:[%s3040_s2 + $0x18] sm:$0xff]  ;;  %v71_v10 = vld [vmem:[%s3040_s2 + $0x28] sm:$0xff]  ;;  %v68_v11 = vld [vmem:[%s3040_s2 + $0x10] sm:$0xff] }
   0x4   :  { %101 = vperm.xlu2 %1771, %v63_v4   ;;  %v61_v12 = vld [vmem:[%s3041_s1 + $0x18] sm:$0xff]  ;;  %v70_v14 = vld [vmem:[%s3040_s2 + $0x20] sm:$0xff]  ;;  %v60_v15 = vld [vmem:[%s3041_s1 + $0x10] sm:$0xff] }
   0x5   :  { %v59_v16 = vld [vmem:[%s3041_s1 + $0x8] sm:$0xff]  ;;  %v58_v17 = vld [vmem:[%s3041_s1] sm:$0xff] }
   0x6   :  { %v67_v18 = vld [vmem:[%s3040_s2 + $0x8] sm:$0xff]  ;;  %v66_v21 = vld [vmem:[%s3040_s2] sm:$0xff] }
   0x7   :  { %v56_v29 = vld [vmem:[%s3042_s0] sm:$0xff]  ;;  %v57_v30 = vld [vmem:[%s3042_s0 + $0x8] sm:$0xff] }
   0x8   :  { %v116_v32 = vperm.slane %v56_v29, 0  ;;  %v117_v33 = vperm.slane %v56_v29, 4  ;;  %v118_v34 = vperm.slane %v57_v30, 0  ;;  %v119_v35 = vperm.slane %v57_v30, 4 }
   0x9   :  { %v264_v41 = vperm.slane %v56_v29, 1  ;;  %v265_v42 = vperm.slane %v56_v29, 5  ;;  %v266_v43 = vperm.slane %v57_v30, 1  ;;  %v267_v44 = vperm.slane %v57_v30, 5 }
   0xa   :  { %1770 = vset.pattern.permute.xlu1 %v1833_v0  ;;  %1773 = vset.pattern.permute.xlu0 %v1834_v1  ;;  %v1968_v37 = vperm.slane %v116_v32, 0  ;;  %v1970_v38 = vperm.slane %v117_v33, 0  ;;  %v1972_v39 = vperm.slane %v118_v34, 0  ;;  %v1974_v40 = vperm.slane %v119_v35, 0 }
   0xb   :  { %261 = vperm.xlu1 %1770, %v65_v5   ;;  %111 = vperm.xlu0 %1773, %v65_v5   ;;  %v372_v46 = vperm.slane %v56_v29, 2  ;;  %v373_v47 = vperm.slane %v56_v29, 6  ;;  %v374_v48 = vperm.slane %v57_v30, 2  ;;  %v375_v49 = vperm.slane %v57_v30, 6 }
   0xc   :  { %192 = vperm.xlu2 %1771, %v72_v6   ;;  %v1984_v55 = vperm.slane %v264_v41, 1  ;;  %v1986_v56 = vperm.slane %v265_v42, 1  ;;  %v1988_v57 = vperm.slane %v266_v43, 1  ;;  %v1990_v58 = vperm.slane %v267_v44, 1 }
   0xd   :  { %v1994_v60 = vperm.slane %v372_v46, 2  ;;  %v1996_v61 = vperm.slane %v373_v47, 2  ;;  %v1998_v62 = vperm.slane %v374_v48, 2  ;;  %v2000_v63 = vperm.slane %v375_v49, 2 }
   0xe   :  { %v482_v2 = vperm.slane %v57_v30, 3 }
   0xf   :  { %3050 = vst [vmem:[#allocation2_spill] sm:$0xff] %v1996_v61 }
  0x10   :  { %3051 = vst [vmem:[#allocation3_spill] sm:$0xff] %v1998_v62 }
  0x13   :  { %1774 = vset.pattern.permute.xlu1 %v1835_v8  ;;  %106 = vperm.xlu0 %1773, %v64_v3  }
  0x14   :  { %369 = vperm.xlu1 %1774, %v65_v5   ;;  %96 = vperm.xlu2 %1771, %v62_v7  }
  0x1b   :  { %177 = vperm.xlu0 %1773, %v69_v9  }
  0x1c   :  { %1775 = vset.pattern.permute.xlu1 %v1834_v1  ;;  %1776 = vset.pattern.permute.xlu2 %v1833_v0 }
  0x1d   :  { %187 = vperm.xlu1 %1775, %v71_v10   ;;  %253 = vperm.xlu2 %1776, %v63_v4  }
  0x23   :  { %172 = vperm.xlu0 %1773, %v68_v11  }
  0x25   :  { %1777 = vset.pattern.permute.xlu1 %v1836_v13  ;;  %1778 = vset.pattern.permute.xlu2 %v1834_v1 }
  0x26   :  { %477 = vperm.xlu1 %1777, %v65_v5   ;;  %91 = vperm.xlu2 %1778, %v61_v12  }
  0x2b   :  { %1789 = vset.pattern.permute.xlu0 %v1836_v13 }
  0x2c   :  { %465 = vperm.xlu0 %1789, %v62_v7  }
  0x2e   :  { %1779 = vset.pattern.permute.xlu1 %v1834_v1  ;;  %1780 = vset.pattern.permute.xlu2 %v1833_v0 }
  0x2f   :  { %182 = vperm.xlu1 %1779, %v70_v14   ;;  %249 = vperm.xlu2 %1780, %v62_v7  }
  0x34   :  { %461 = vperm.xlu0 %1789, %v61_v12  }
  0x37   :  { %1781 = vset.pattern.permute.xlu1 %v1836_v13  ;;  %1782 = vset.pattern.permute.xlu2 %v1834_v1 }
  0x38   :  { %473 = vperm.xlu1 %1781, %v64_v3   ;;  %86 = vperm.xlu2 %1782, %v60_v15  }
  0x3c   :  { %1794 = vset.pattern.permute.xlu0 %v1835_v8 }
  0x3d   :  { %365 = vperm.xlu0 %1794, %v64_v3   ;;  %v483_v3 = vperm.slane %v57_v30, 7 }
  0x40   :  { %1783 = vset.pattern.permute.xlu1 %v1833_v0  ;;  %1784 = vset.pattern.permute.xlu2 %v1835_v8 }
  0x41   :  { %245 = vperm.xlu1 %1783, %v61_v12   ;;  %357 = vperm.xlu2 %1784, %v62_v7  }
  0x45   :  { %361 = vperm.xlu0 %1794, %v63_v4  }
  0x49   :  { %1785 = vset.pattern.permute.xlu1 %v1836_v13  ;;  %1786 = vset.pattern.permute.xlu2 %v1834_v1 }
  0x4a   :  { %469 = vperm.xlu1 %1785, %v63_v4   ;;  %81 = vperm.xlu2 %1786, %v59_v16  }
  0x4d   :  { %345 = vperm.xlu0 %1794, %v59_v16  }
  0x52   :  { %1787 = vset.pattern.permute.xlu1 %v1833_v0  ;;  %1788 = vset.pattern.permute.xlu2 %v1835_v8 }
  0x53   :  { %241 = vperm.xlu1 %1787, %v60_v15   ;;  %353 = vperm.xlu2 %1788, %v61_v12  }
  0x55   :  { %1800 = vset.pattern.permute.xlu0 %v1836_v13 }
  0x5b   :  { %1790 = vset.pattern.permute.xlu1 %v1834_v1  ;;  %1791 = vset.pattern.permute.xlu2 %v1834_v1 }
  0x5c   :  { %76 = vperm.xlu1 %1790, %v58_v17   ;;  %167 = vperm.xlu2 %1791, %v67_v18  }
  0x5e   :  { %v1938_v19 = vpop.permute.xlu2 %101 }
  0x5f   :  { %v2024_v33 = vmul.f32 %v1968_v37, %v1938_v19  ;;  %v2028_v34 = vmul.f32 %v1970_v38, %v1938_v19  ;;  %v2032_v35 = vmul.f32 %v1972_v39, %v1938_v19 }
  0x64   :  { %1792 = vset.pattern.permute.xlu1 %v1833_v0  ;;  %1793 = vset.pattern.permute.xlu2 %v1835_v8 }
  0x65   :  { %237 = vperm.xlu1 %1792, %v59_v16   ;;  %349 = vperm.xlu2 %1793, %v60_v15  }
  0x66   :  { %v1942_v20 = vpop.permute.xlu2 %192 }
  0x6d   :  { %1795 = vset.pattern.permute.xlu1 %v1834_v1  ;;  %1796 = vset.pattern.permute.xlu2 %v1833_v0  ;;  %v480_v0 = vperm.slane %v56_v29, 3  ;;  %v481_v1 = vperm.slane %v56_v29, 7 }
  0x6e   :  { %162 = vperm.xlu1 %1795, %v66_v21   ;;  %233 = vperm.xlu2 %1796, %v58_v17   ;;  %v1949_v22 = vpop.permute.xlu2 %96  ;;  %v2016_v21 = vperm.slane %v482_v2, 3 }
  0x6f   :  { %v2014_v18 = vperm.slane %v481_v1, 3 }
  0x74   :  { %v198_v23 = vpop.permute.xlu1 %197  ;;  %v1951_v24 = vpop.permute.xlu0 %257 }
  0x76   :  { %1797 = vset.pattern.permute.xlu1 %v1836_v13  ;;  %1798 = vset.pattern.permute.xlu2 %v1835_v8 }
  0x77   :  { %457 = vperm.xlu1 %1797, %v60_v15   ;;  %341 = vperm.xlu2 %1798, %v58_v17   ;;  %v1955_v25 = vpop.permute.xlu2 %253 }
  0x7d   :  { %v262_v26 = vpop.permute.xlu1 %261  ;;  %v112_v27 = vpop.permute.xlu0 %111 }
  0x7e   :  { %v156_v51 = vmul.f32 %v1968_v37, %v112_v27  ;;  %v157_v52 = vmul.f32 %v1970_v38, %v112_v27  ;;  %v158_v53 = vmul.f32 %v1972_v39, %v112_v27  ;;  %v159_v54 = vmul.f32 %v1974_v40, %v112_v27 }
  0x7f   :  { %453 = vperm.xlu1 %1797, %v59_v16   ;;  %1799 = vset.pattern.permute.xlu2 %v1836_v13  ;;  %v304_v8 = vmul.f32 %v1984_v55, %v262_v26  ;;  %v305_v9 = vmul.f32 %v1986_v56, %v262_v26  ;;  %v306_v10 = vmul.f32 %v1988_v57, %v262_v26 }
  0x80   :  { %449 = vperm.xlu2 %1799, %v58_v17   ;;  %v1958_v28 = vpop.permute.xlu2 %91  ;;  %v228_v4 = vadd.f32 %v198_v23, %v156_v51  ;;  %v229_v5 = vadd.f32 %v198_v23, %v157_v52  ;;  %v230_v6 = vadd.f32 %v198_v23, %v158_v53  ;;  %v231_v7 = vadd.f32 %v198_v23, %v159_v54 }
  0x81   :  { %v307_v11 = vmul.f32 %v1990_v58, %v262_v26  ;;  %v2012_v17 = vperm.slane %v480_v0, 3  ;;  %v2018_v23 = vperm.slane %v483_v3, 3  ;;  %v144_v52 = vmul.f32 %v1968_v37, %v1949_v22 }
  0x82   :  { %v336_v26 = vadd.f32 %v304_v8, %v228_v4  ;;  %v337_v29 = vadd.f32 %v305_v9, %v229_v5  ;;  %v338_v30 = vadd.f32 %v306_v10, %v230_v6  ;;  %v146_v53 = vmul.f32 %v1972_v39, %v1949_v22 }
  0x83   :  { %v339_v32 = vadd.f32 %v307_v11, %v231_v7  ;;  %v147_v54 = vmul.f32 %v1974_v40, %v1949_v22  ;;  %v300_v4 = vmul.f32 %v1984_v55, %v1951_v24  ;;  %v301_v5 = vmul.f32 %v1986_v56, %v1951_v24 }
  0x84   :  { %v2056_v6 = vmul.f32 %v1988_v57, %v1951_v24  ;;  %v2060_v7 = vmul.f32 %v1990_v58, %v1951_v24 }
  0x85   :  { %v1966_v31 = vpop.permute.xlu0 %106 }
  0x86   :  { %v370_v36 = vpop.permute.xlu1 %369  ;;  %v152_v24 = vmul.f32 %v1968_v37, %v1966_v31 }
  0x87   :  { %v412_v12 = vmul.f32 %v1994_v60, %v370_v36  ;;  %v413_v13 = vmul.f32 %v1996_v61, %v370_v36  ;;  %v414_v14 = vmul.f32 %v1998_v62, %v370_v36  ;;  %v415_v15 = vmul.f32 %v2000_v63, %v370_v36 }
  0x88   :  { %v2036_v36 = vmul.f32 %v1974_v40, %v1938_v19  ;;  %v145_v19 = vmul.f32 %v1970_v38, %v1949_v22 }
  0x89   :  { %v1976_v45 = vpop.permute.xlu2 %249  ;;  %v444_v42 = vadd.f32 %v412_v12, %v336_v26  ;;  %v445_v43 = vadd.f32 %v413_v13, %v337_v29  ;;  %v446_v44 = vadd.f32 %v414_v14, %v338_v30  ;;  %v447_v46 = vadd.f32 %v415_v15, %v339_v32 }
  0x8a   :  { %v296_v12 = vmul.f32 %v1984_v55, %v1955_v25  ;;  %v297_v13 = vmul.f32 %v1986_v56, %v1955_v25  ;;  %v153_v14 = vmul.f32 %v1970_v38, %v1966_v31 }
  0x8d   :  { %v1978_v50 = vpop.permute.xlu0 %177 }
  0x8f   :  { %v1992_v59 = vpop.permute.xlu1 %187 }
  0x92   :  { %v2020_v27 = vpop.permute.xlu2 %86 }
  0x95   :  { %v2010_v16 = vpop.permute.xlu0 %172 }
  0x98   :  { %v478_v41 = vpop.permute.xlu1 %477 }
  0x99   :  { %v520_v47 = vmul.f32 %v2012_v17, %v478_v41  ;;  %v521_v48 = vmul.f32 %v2014_v18, %v478_v41  ;;  %v522_v49 = vmul.f32 %v2016_v21, %v478_v41  ;;  %v523_v51 = vmul.f32 %v2018_v23, %v478_v41 }
  0x9a   :  { %v154_v41 = vmul.f32 %v1972_v39, %v1966_v31 }
  0x9b   :  { %v552_v0 = vadd.f32 %v520_v47, %v444_v42  ;;  %v553_v1 = vadd.f32 %v521_v48, %v445_v43  ;;  %v554_v2 = vadd.f32 %v522_v49, %v446_v44  ;;  %v555_v3 = vadd.f32 %v523_v51, %v447_v46  ;;  %v358_v15 = vpop.permute.xlu2 %357 }
  0x9c   :  { %v292_v42 = vmul.f32 %v1984_v55, %v1976_v45  ;;  %v293_v43 = vmul.f32 %v1986_v56, %v1976_v45  ;;  %v155_v46 = vmul.f32 %v1974_v40, %v1966_v31  ;;  %v298_v49 = vmul.f32 %v1988_v57, %v1955_v25 }
  0x9d   :  { %vm584_vm0 = vcmp.ge.f32.partialorder %v552_v0, 0.0  ;;  %v616_v22 = vmul.f32 0.2, %v552_v0  ;;  %vm585_vm1 = vcmp.ge.f32.partialorder %v553_v1, 0.0  ;;  %v617_v8 = vmul.f32 0.2, %v553_v1 }
  0x9e   :  { %v2062_v9 = vpop.permute.xlu0 %465  ;;  %vm586_vm2 = vcmp.ge.f32.partialorder %v554_v2, 0.0  ;;  %v618_v10 = vmul.f32 0.2, %v554_v2  ;;  %vm587_vm3 = vcmp.ge.f32.partialorder %v555_v3, 0.0  ;;  %v619_v11 = vmul.f32 0.2, %v555_v3 }
  0x9f   :  { %v648_v26 = vsel %vm584_vm0, %v552_v0, %v616_v22  ;;  %v649_v29 = vsel %vm585_vm1, %v553_v1, %v617_v8  ;;  %v299_v51 = vmul.f32 %v1990_v58, %v1955_v25  ;;  %v224_v0 = vadd.f32 %v1942_v20, %v152_v24 }
  0xa0   :  { %v650_v30 = vsel %vm586_vm2, %v554_v2, %v618_v10  ;;  %v651_v32 = vsel %vm587_vm3, %v555_v3, %v619_v11  ;;  %725 = vmatpush.msra.mxu0 %v648_v26  ;;  %790 = vmatpush.msra.mxu1 %v649_v29  ;;  %v225_v1 = vadd.f32 %v1942_v20, %v153_v14 }
  0xa1   :  { %v183_v44 = vpop.permute.xlu1 %182  ;;  %855 = vmatpush.msra.mxu2 %v650_v30  ;;  %920 = vmatpush.msra.mxu3 %v651_v32  ;;  %v140_v2 = vmul.f32 %v1968_v37, %v1958_v28  ;;  %v141_v31 = vmul.f32 %v1970_v38, %v1958_v28  ;;  %v401_v25 = vmul.f32 %v1996_v61, %v358_v15 }
  0xa2   :  { %v216_v47 = vadd.f32 %v183_v44, %v144_v52  ;;  %v217_v48 = vadd.f32 %v183_v44, %v145_v19  ;;  %v294_v52 = vmul.f32 %v1988_v57, %v1976_v45  ;;  %v400_v19 = vmul.f32 %v1994_v60, %v358_v15 }
  0xa3   :  { %v218_v3 = vadd.f32 %v183_v44, %v146_v53  ;;  %v226_v10 = vadd.f32 %v1942_v20, %v154_v41  ;;  %v227_v11 = vadd.f32 %v1942_v20, %v155_v46  ;;  %v142_v24 = vmul.f32 %v1972_v39, %v1958_v28 }
  0xa4   :  { %v324_v22 = vadd.f32 %v292_v42, %v216_v47  ;;  %v325_v8 = vadd.f32 %v293_v43, %v217_v48  ;;  %v143_v14 = vmul.f32 %v1974_v40, %v1958_v28  ;;  %v295_v29 = vmul.f32 %v1990_v58, %v1976_v45  ;;  %v2102_v53 = vpop.permute.xlu2 %81 }
  0xa5   :  { %v219_v30 = vadd.f32 %v183_v44, %v147_v54  ;;  %v332_v32 = vadd.f32 %v300_v4, %v224_v0  ;;  %v333_v42 = vadd.f32 %v301_v5, %v225_v1  ;;  %v220_v41 = vadd.f32 %v1992_v59, %v2024_v33 }
  0xa6   :  { %v462_v26 = vpop.permute.xlu0 %461  ;;  %v221_v20 = vadd.f32 %v1992_v59, %v2028_v34  ;;  %v508_v43 = vmul.f32 %v2012_v17, %v2062_v9  ;;  %v402_v28 = vmul.f32 %v1998_v62, %v358_v15  ;;  %v509_v46 = vmul.f32 %v2014_v18, %v2062_v9 }
  0xa7   :  { %v326_v45 = vadd.f32 %v294_v52, %v218_v3  ;;  %v432_v54 = vadd.f32 %v400_v19, %v324_v22  ;;  %v433_v44 = vadd.f32 %v401_v25, %v325_v8  ;;  %v222_v4 = vadd.f32 %v1992_v59, %v2032_v35 }
  0xa8   :  { %v223_v33 = vadd.f32 %v1992_v59, %v2036_v36  ;;  %v334_v34 = vadd.f32 %v2056_v6, %v226_v10  ;;  %v335_v47 = vadd.f32 %v2060_v7, %v227_v11  ;;  %v2120_v48 = vadd.f32 %v1978_v50, %v140_v2 }
  0xa9   :  { %v2123_v0 = vadd.f32 %v1978_v50, %v141_v31  ;;  %v327_v1 = vadd.f32 %v295_v29, %v219_v30  ;;  %v403_v52 = vmul.f32 %v2000_v63, %v358_v15  ;;  %v2126_v19 = vadd.f32 %v296_v12, %v220_v41 }
  0xaa   :  { %v474_v5 = vpop.permute.xlu1 %473  ;;  %v2128_v35 = vadd.f32 %v297_v13, %v221_v20  ;;  %v2131_v59 = vadd.f32 %v1978_v50, %v142_v24  ;;  %v2134_v36 = vadd.f32 %v1978_v50, %v143_v14  ;;  %v510_v6 = vmul.f32 %v2016_v21, %v2062_v9 }
  0xab   :  { %v2138_v7 = vadd.f32 %v508_v43, %v432_v54  ;;  %v2140_v2 = vadd.f32 %v509_v46, %v433_v44  ;;  %v434_v31 = vadd.f32 %v402_v28, %v326_v45  ;;  %v2142_v3 = vadd.f32 %v298_v49, %v222_v4 }
  0xac   :  { %v2144_v12 = vadd.f32 %v299_v51, %v223_v33  ;;  %v511_v13 = vmul.f32 %v2018_v23, %v2062_v9  ;;  %v2149_v15 = vmul.f32 %v2012_v17, %v462_v26  ;;  %v2152_v50 = vmul.f32 %v2014_v18, %v462_v26 }
  0xad   :  { %v2155_v22 = vmul.f32 %v2016_v21, %v462_v26  ;;  %v2158_v8 = vmul.f32 %v2018_v23, %v462_v26  ;;  %v435_v49 = vadd.f32 %v403_v52, %v327_v1  ;;  %v516_v24 = vmul.f32 %v2012_v17, %v474_v5  ;;  %v354_v14 = vpop.permute.xlu2 %353 }
  0xae   :  { %v604_v29 = vmul.f32 0.2, %v2138_v7  ;;  %v2167_v30 = vmul.f32 0.2, %v2140_v2  ;;  %v2169_v26 = vadd.f32 %v510_v6, %v434_v31  ;;  %v517_v46 = vmul.f32 %v2014_v18, %v474_v5 }
  0xaf   :  { %v366_v25 = vpop.permute.xlu0 %365  ;;  %v518_v45 = vmul.f32 %v2016_v21, %v474_v5  ;;  %v519_v54 = vmul.f32 %v2018_v23, %v474_v5  ;;  %vm572_vm4 = vcmp.ge.f32.partialorder %v2138_v7, 0.0  ;;  %v2175_v4 = vadd.f32 %v511_v13, %v435_v49 }
  0xb0   :  { %v408_v51 = vmul.f32 %v1994_v60, %v366_v25  ;;  %v409_v10 = vmul.f32 %v1996_v61, %v366_v25  ;;  %v410_v9 = vmul.f32 %v1998_v62, %v366_v25  ;;  %v411_v11 = vmul.f32 %v2000_v63, %v366_v25 }
  0xb1   :  { %v396_v33 = vmul.f32 %v1994_v60, %v354_v14  ;;  %v397_v1 = vmul.f32 %v1996_v61, %v354_v14  ;;  %vm573_vm9 = vcmp.ge.f32.partialorder %v2140_v2, 0.0  ;;  %vm574_vm10 = vcmp.ge.f32.partialorder %v2169_v26, 0.0 }
  0xb2   :  { %v440_v41 = vadd.f32 %v408_v51, %v332_v32  ;;  %v441_v20 = vadd.f32 %v409_v10, %v333_v42  ;;  %v442_v43 = vadd.f32 %v410_v9, %v334_v34  ;;  %v443_v28 = vadd.f32 %v411_v11, %v335_v47 }
  0xb3   :  { %v246_v44 = vpop.permute.xlu1 %245  ;;  %v398_v32 = vmul.f32 %v1998_v62, %v354_v14  ;;  %v399_v42 = vmul.f32 %v2000_v63, %v354_v14  ;;  %vm575_vm15 = vcmp.ge.f32.partialorder %v2175_v4, 0.0 }
  0xb4   :  { %v288_v34 = vmul.f32 %v1984_v55, %v246_v44  ;;  %v548_v47 = vadd.f32 %v516_v24, %v440_v41  ;;  %v549_v52 = vadd.f32 %v517_v46, %v441_v20  ;;  %v550_v6 = vadd.f32 %v518_v45, %v442_v43 }
  0xb5   :  { %v289_v5 = vmul.f32 %v1986_v56, %v246_v44  ;;  %v290_v31 = vmul.f32 %v1988_v57, %v246_v44  ;;  %v291_v13 = vmul.f32 %v1990_v58, %v246_v44  ;;  %v551_v25 = vadd.f32 %v519_v54, %v443_v28 }
  0xb6   :  { %vm580_vm5 = vcmp.ge.f32.partialorder %v548_v47, 0.0  ;;  %v612_v51 = vmul.f32 0.2, %v548_v47  ;;  %vm581_vm6 = vcmp.ge.f32.partialorder %v549_v52, 0.0  ;;  %v613_v10 = vmul.f32 0.2, %v549_v52 }
  0xb7   :  { %v362_v49 = vpop.permute.xlu0 %361  ;;  %vm582_vm7 = vcmp.ge.f32.partialorder %v550_v6, 0.0  ;;  %v614_v43 = vmul.f32 0.2, %v550_v6  ;;  %v320_v46 = vadd.f32 %v288_v34, %v2120_v48  ;;  %v321_v28 = vadd.f32 %v289_v5, %v2123_v0 }
  0xb8   :  { %v404_v9 = vmul.f32 %v1994_v60, %v362_v49  ;;  %v405_v11 = vmul.f32 %v1996_v61, %v362_v49  ;;  %v406_v24 = vmul.f32 %v1998_v62, %v362_v49  ;;  %v407_v14 = vmul.f32 %v2000_v63, %v362_v49 }
  0xb9   :  { %v644_v41 = vsel %vm580_vm5, %v548_v47, %v612_v51  ;;  %v645_v20 = vsel %vm581_vm6, %v549_v52, %v613_v10  ;;  %vm583_vm8 = vcmp.ge.f32.partialorder %v551_v25, 0.0  ;;  %v615_v45 = vmul.f32 0.2, %v551_v25 }
  0xba   :  { %726 = vmatpush.msra.mxu0 %v644_v41  ;;  %791 = vmatpush.msra.mxu1 %v645_v20  ;;  %v322_v54 = vadd.f32 %v290_v31, %v2131_v59  ;;  %v323_v44 = vadd.f32 %v291_v13, %v2134_v36  ;;  %v646_v61 = vsel %vm582_vm7, %v550_v6, %v614_v43  ;;  %v606_v49 = vmul.f32 0.2, %v2169_v26 }
  0xbb   :  { %v436_v62 = vadd.f32 %v404_v9, %v2126_v19  ;;  %856 = vmatpush.msra.mxu2 %v646_v61  ;;  %v647_v47 = vsel %vm583_vm8, %v551_v25, %v615_v45  ;;  %v437_v48 = vadd.f32 %v405_v11, %v2128_v35  ;;  %v438_v0 = vadd.f32 %v406_v24, %v2142_v3  ;;  %v2206_v3 = vpop.permute.xlu2 %167 }
  0xbc   :  { %v470_v52 = vpop.permute.xlu1 %469  ;;  %v439_v34 = vadd.f32 %v407_v14, %v2144_v12  ;;  %921 = vmatpush.msra.mxu3 %v647_v47  ;;  %v636_v61 = vsel %vm572_vm4, %v2138_v7, %v604_v29  ;;  %v428_v35 = vadd.f32 %v396_v33, %v320_v46  ;;  %v429_v6 = vadd.f32 %v397_v1, %v321_v28 }
  0xbd   :  { %v512_v5 = vmul.f32 %v2012_v17, %v470_v52  ;;  %v513_v59 = vmul.f32 %v2014_v18, %v470_v52  ;;  %v514_v36 = vmul.f32 %v2016_v21, %v470_v52  ;;  %v515_v19 = vmul.f32 %v2018_v23, %v470_v52 }
  0xbe   :  { %v607_v51 = vmul.f32 0.2, %v2175_v4  ;;  %v430_v10 = vadd.f32 %v398_v32, %v322_v54  ;;  %v431_v9 = vadd.f32 %v399_v42, %v323_v44  ;;  %v537_v14 = vadd.f32 %v2152_v50, %v429_v6 }
  0xbf   :  { %v544_v12 = vadd.f32 %v512_v5, %v436_v62  ;;  %v545_v31 = vadd.f32 %v513_v59, %v437_v48  ;;  %v546_v13 = vadd.f32 %v514_v36, %v438_v0  ;;  %v547_v25 = vadd.f32 %v515_v19, %v439_v34 }
  0xc0   :  { %v536_v62 = vadd.f32 %v2149_v15, %v428_v35  ;;  %v538_v32 = vadd.f32 %v2155_v22, %v430_v10  ;;  %vm569_vm1 = vcmp.ge.f32.partialorder %v537_v14, 0.0  ;;  %v601_v46 = vmul.f32 0.2, %v537_v14 }
  0xc1   :  { %vm576_vm11 = vcmp.ge.f32.partialorder %v544_v12, 0.0  ;;  %v608_v11 = vmul.f32 0.2, %v544_v12  ;;  %vm577_vm12 = vcmp.ge.f32.partialorder %v545_v31, 0.0  ;;  %v609_v7 = vmul.f32 0.2, %v545_v31 }
  0xc2   :  { %vm578_vm13 = vcmp.ge.f32.partialorder %v546_v13, 0.0  ;;  %v610_v29 = vmul.f32 0.2, %v546_v13  ;;  %vm579_vm14 = vcmp.ge.f32.partialorder %v547_v25, 0.0  ;;  %v611_v33 = vmul.f32 0.2, %v547_v25 }
  0xc3   :  { %v640_v1 = vsel %vm576_vm11, %v544_v12, %v608_v11  ;;  %v641_v24 = vsel %vm577_vm12, %v545_v31, %v609_v7  ;;  %vm568_vm0 = vcmp.ge.f32.partialorder %v536_v62, 0.0  ;;  %v600_v43 = vmul.f32 0.2, %v536_v62  ;;  %v350_v44 = vpop.permute.xlu2 %349 }
  0xc4   :  { %727 = vmatpush.msra.mxu0 %v640_v1  ;;  %792 = vmatpush.msra.mxu1 %v641_v24  ;;  %v642_v41 = vsel %vm578_vm13, %v546_v13, %v610_v29  ;;  %v643_v20 = vsel %vm579_vm14, %v547_v25, %v611_v33  ;;  %v637_v15 = vsel %vm573_vm9, %v2140_v2, %v2167_v30  ;;  %vm570_vm2 = vcmp.ge.f32.partialorder %v538_v32, 0.0  ;;  %v3052_v33 = vld [vmem:[#allocation2_spill] sm:$0xff]  ;;  %v3053_v24 = vld [vmem:[#allocation3_spill] sm:$0xff] }
  0xc5   :  { %857 = vmatpush.msra.mxu2 %v642_v41  ;;  %922 = vmatpush.msra.mxu3 %v643_v20  ;;  %v242_v42 = vpop.permute.xlu1 %241  ;;  %v638_v50 = vsel %vm574_vm10, %v2169_v26, %v606_v49  ;;  %v639_v22 = vsel %vm575_vm15, %v2175_v4, %v607_v51  ;;  %v602_v28 = vmul.f32 0.2, %v538_v32  ;;  %v632_v45 = vsel %vm568_vm0, %v536_v62, %v600_v43 }
  0xc6   :  { %728 = vmatpush.msra.mxu0 %v636_v61  ;;  %793 = vmatpush.msra.mxu1 %v637_v15  ;;  %v633_v54 = vsel %vm569_vm1, %v537_v14, %v601_v46  ;;  %v539_v52 = vadd.f32 %v2158_v8, %v431_v9  ;;  %v136_v4 = vmul.f32 %v1968_v37, %v2020_v27  ;;  %vm668_vm0 = vcmask 523264  }
  0xc7   :  { %858 = vmatpush.msra.mxu2 %v638_v50  ;;  %923 = vmatpush.msra.mxu3 %v639_v22  ;;  %v634_v47 = vsel %vm570_vm2, %v538_v32, %v602_v28  ;;  %v137_v0 = vmul.f32 %v1970_v38, %v2020_v27  ;;  %v138_v5 = vmul.f32 %v1972_v39, %v2020_v27  ;;  %vm23_vm1 = vcmask 7168  }
  0xc8   :  { %729 = vmatpush.msra.mxu0 %v632_v45  ;;  %794 = vmatpush.msra.mxu1 %v633_v54  ;;  %vm571_vm3 = vcmp.ge.f32.partialorder %v539_v52, 0.0  ;;  %v603_v2 = vmul.f32 0.2, %v539_v52  ;;  %v139_v8 = vmul.f32 %v1974_v40, %v2020_v27  ;;  %v132_v59 = vmul.f32 %v1968_v37, %v2102_v53 }
  0xc9   :  { %859 = vmatpush.msra.mxu2 %v634_v47  ;;  %v133_v36 = vmul.f32 %v1970_v38, %v2102_v53  ;;  %v134_v19 = vmul.f32 %v1972_v39, %v2102_v53  ;;  %v135_v61 = vmul.f32 %v1974_v40, %v2102_v53  ;;  %v284_v35 = vmul.f32 %v1984_v55, %v242_v42 }
  0xca   :  { %v635_v30 = vsel %vm571_vm3, %v539_v52, %v603_v2  ;;  %v208_v6 = vadd.f32 %v2010_v16, %v136_v4  ;;  %v209_v12 = vadd.f32 %v2010_v16, %v137_v0  ;;  %v285_v27 = vmul.f32 %v1986_v56, %v242_v42 }
  0xcb   :  { %924 = vmatpush.msra.mxu3 %v635_v30  ;;  %v234_v48 = vpop.permute.xlu2 %233  ;;  %v286_v31 = vmul.f32 %v1988_v57, %v242_v42  ;;  %v210_v25 = vadd.f32 %v2010_v16, %v138_v5  ;;  %v211_v49 = vadd.f32 %v2010_v16, %v139_v8  ;;  %v204_v51 = vadd.f32 %v2206_v3, %v132_v59 }
  0xcc   :  { %v287_v10 = vmul.f32 %v1990_v58, %v242_v42  ;;  %v205_v53 = vadd.f32 %v2206_v3, %v133_v36  ;;  %v206_v9 = vadd.f32 %v2206_v3, %v134_v19  ;;  %v207_v11 = vadd.f32 %v2206_v3, %v135_v61  ;;  %v346_v42 = vpop.permute.xlu0 %345 }
  0xcd   :  { %v392_v7 = vmul.f32 %v1994_v60, %v350_v44  ;;  %v316_v29 = vadd.f32 %v284_v35, %v208_v6  ;;  %v393_v1 = vmul.f32 %v3052_v33, %v350_v44  ;;  %v394_v62 = vmul.f32 %v3053_v24, %v350_v44 }
  0xce   :  { %v77_v26 = vpop.permute.xlu1 %76  ;;  %v395_v14 = vmul.f32 %v2000_v63, %v350_v44  ;;  %v317_v16 = vadd.f32 %v285_v27, %v209_v12  ;;  %v318_v41 = vadd.f32 %v286_v31, %v210_v25  ;;  %v319_v43 = vadd.f32 %v287_v10, %v211_v49 }
  0xcf   :  { %v128_v20 = vmul.f32 %v1968_v37, %v77_v26  ;;  %v129_v32 = vmul.f32 %v1970_v38, %v77_v26  ;;  %v276_v46 = vmul.f32 %v1984_v55, %v234_v48  ;;  %v277_v3 = vmul.f32 %v1986_v56, %v234_v48 }
  0xd0   :  { %v278_v15 = vmul.f32 %v1988_v57, %v234_v48  ;;  %v130_v22 = vmul.f32 %v1972_v39, %v77_v26  ;;  %v279_v28 = vmul.f32 %v1990_v58, %v234_v48  ;;  %v388_v44 = vmul.f32 %v1994_v60, %v346_v42 }
  0xd1   :  { %v389_v37 = vmul.f32 %v3052_v33, %v346_v42  ;;  %v390_v38 = vmul.f32 %v3053_v24, %v346_v42  ;;  %v391_v47 = vmul.f32 %v2000_v63, %v346_v42  ;;  %v131_v52 = vmul.f32 %v1974_v40, %v77_v26 }
  0xd2   :  { %v424_v5 = vadd.f32 %v392_v7, %v316_v29  ;;  %v425_v26 = vadd.f32 %v393_v1, %v317_v16  ;;  %v427_v35 = vadd.f32 %v395_v14, %v319_v43 }
  0xd3   :  { %v342_v13 = vpop.permute.xlu2 %341 }
  0xd4   :  { %v384_v0 = vmul.f32 %v1994_v60, %v342_v13  ;;  %v385_v8 = vmul.f32 %v3052_v33, %v342_v13  ;;  %v386_v40 = vmul.f32 %v3053_v24, %v342_v13 }
  0xd7   :  { %v238_v34 = vpop.permute.xlu1 %237 }
  0xd8   :  { %v280_v2 = vmul.f32 %v1984_v55, %v238_v34  ;;  %v281_v30 = vmul.f32 %v1986_v56, %v238_v34  ;;  %v282_v39 = vmul.f32 %v1988_v57, %v238_v34  ;;  %v283_v48 = vmul.f32 %v1990_v58, %v238_v34 }
  0xd9   :  { %v426_v55 = vadd.f32 %v394_v62, %v318_v41  ;;  %v387_v57 = vmul.f32 %v2000_v63, %v342_v13 }
  0xda   :  { %v312_v56 = vadd.f32 %v280_v2, %v204_v51  ;;  %v313_v6 = vadd.f32 %v281_v30, %v205_v53  ;;  %v314_v58 = vadd.f32 %v282_v39, %v206_v9  ;;  %v315_v34 = vadd.f32 %v283_v48, %v207_v11 }
  0xdb   :  { %v450_v61 = vpop.permute.xlu2 %449 }
  0xdc   :  { %v492_v60 = vmul.f32 %v2012_v17, %v450_v61  ;;  %v493_v27 = vmul.f32 %v2014_v18, %v450_v61  ;;  %v494_v25 = vmul.f32 %v2016_v21, %v450_v61  ;;  %v495_v13 = vmul.f32 %v2018_v23, %v450_v61 }
  0xdd   :  { %v420_v9 = vadd.f32 %v388_v44, %v312_v56  ;;  %v421_v11 = vadd.f32 %v389_v37, %v313_v6  ;;  %v422_v16 = vadd.f32 %v390_v38, %v314_v58  ;;  %v655_v58 = vld [vmem:[%s3043_s3 + $0x18] sm:$0xff] }
  0xe0   :  { %v163_v50 = vpop.permute.xlu1 %162 }
  0xe1   :  { %v200_v45 = vadd.f32 %v163_v50, %v128_v20  ;;  %v201_v54 = vadd.f32 %v163_v50, %v129_v32  ;;  %v202_v4 = vadd.f32 %v163_v50, %v130_v22  ;;  %v203_v59 = vadd.f32 %v163_v50, %v131_v52 }
  0xe2   :  { %v423_v22 = vadd.f32 %v391_v47, %v315_v34  ;;  %v656_v34 = vld [vmem:[%s3043_s3 + $0x20] sm:$0xff] }
  0xe3   :  { %v308_v36 = vadd.f32 %v276_v46, %v200_v45  ;;  %v309_v19 = vadd.f32 %v277_v3, %v201_v54  ;;  %v310_v12 = vadd.f32 %v278_v15, %v202_v4  ;;  %v311_v31 = vadd.f32 %v279_v28, %v203_v59 }
  0xe5   :  { %v416_v10 = vadd.f32 %v384_v0, %v308_v36  ;;  %v417_v7 = vadd.f32 %v385_v8, %v309_v19  ;;  %v418_v33 = vadd.f32 %v386_v40, %v310_v12  ;;  %v419_v32 = vadd.f32 %v387_v57, %v311_v31  ;;  %v653_v57 = vld [vmem:[%s3043_s3 + $0x8] sm:$0xff]  ;;  %v654_v12 = vld [vmem:[%s3043_s3 + $0x10] sm:$0xff]  ;;  %v659_v31 = vld [vmem:[%s3043_s3 + $0x38] sm:$0xff] }
  0xe7   :  { %v524_v41 = vadd.f32 %v492_v60, %v416_v10  ;;  %v525_v20 = vadd.f32 %v493_v27, %v417_v7  ;;  %v526_v28 = vadd.f32 %v494_v25, %v418_v33  ;;  %v527_v37 = vadd.f32 %v495_v13, %v419_v32  ;;  %v657_v60 = vld [vmem:[%s3043_s3 + $0x28] sm:$0xff]  ;;  %v658_v27 = vld [vmem:[%s3043_s3 + $0x30] sm:$0xff]  ;;  %v660_v25 = vld [vmem:[%s3043_s3 + $0x40] sm:$0xff] }
  0xe8   :  { %v662_v10 = vld [vmem:[%s3043_s3 + $0x50] sm:$0xff]  ;;  %v663_v7 = vld [vmem:[%s3043_s3 + $0x58] sm:$0xff] }
  0xe9   :  { %v458_v49 = vpop.permute.xlu1 %457  ;;  %vm556_vm8 = vcmp.ge.f32.partialorder %v524_v41, 0.0  ;;  %v588_v4 = vmul.f32 0.2, %v524_v41  ;;  %vm557_vm9 = vcmp.ge.f32.partialorder %v525_v20, 0.0  ;;  %v590_v8 = vmul.f32 0.2, %v526_v28 }
  0xea   :  { %v500_v29 = vmul.f32 %v2012_v17, %v458_v49  ;;  %v501_v51 = vmul.f32 %v2014_v18, %v458_v49  ;;  %v502_v53 = vmul.f32 %v2016_v21, %v458_v49  ;;  %v503_v63 = vmul.f32 %v2018_v23, %v458_v49  ;;  %v661_v49 = vld [vmem:[%s3043_s3 + $0x48] sm:$0xff] }
  0xeb   :  { %v591_v59 = vmul.f32 0.2, %v527_v37  ;;  %vm558_vm14 = vcmp.ge.f32.partialorder %v526_v28, 0.0  ;;  %vm559_vm15 = vcmp.ge.f32.partialorder %v527_v37, 0.0 }
  0xec   :  { %v532_v1 = vadd.f32 %v500_v29, %v424_v5  ;;  %v533_v24 = vadd.f32 %v501_v51, %v425_v26  ;;  %v534_v62 = vadd.f32 %v502_v53, %v426_v55  ;;  %v535_v14 = vadd.f32 %v503_v63, %v427_v35  ;;  %v652_v35 = vld [vmem:[%s3043_s3] sm:$0xff]  ;;  %v665_v51 = vld [vmem:[%s3043_s3 + $0x68] sm:$0xff]  ;;  %v666_v53 = vld [vmem:[%s3043_s3 + $0x70] sm:$0xff] }
  0xed   :  { %v589_v5 = vmul.f32 0.2, %v525_v20  ;;  %v620_v26 = vsel %vm556_vm8, %v524_v41, %v588_v4  ;;  %v622_v56 = vsel %vm558_vm14, %v526_v28, %v590_v8  ;;  %v623_v6 = vsel %vm559_vm15, %v527_v37, %v591_v59  ;;  %v664_v29 = vld [vmem:[%s3043_s3 + $0x60] sm:$0xff]  ;;  %v667_v63 = vld [vmem:[%s3043_s3 + $0x78] sm:$0xff] }
  0xee   :  { %vm564_vm4 = vcmp.ge.f32.partialorder %v532_v1, 0.0  ;;  %v596_v42 = vmul.f32 0.2, %v532_v1  ;;  %vm565_vm5 = vcmp.ge.f32.partialorder %v533_v24, 0.0  ;;  %v597_v43 = vmul.f32 0.2, %v533_v24 }
  0xef   :  { %vm566_vm6 = vcmp.ge.f32.partialorder %v534_v62, 0.0  ;;  %v598_v46 = vmul.f32 0.2, %v534_v62  ;;  %vm567_vm7 = vcmp.ge.f32.partialorder %v535_v14, 0.0  ;;  %v599_v3 = vmul.f32 0.2, %v535_v14 }
  0xf0   :  { %v628_v15 = vsel %vm564_vm4, %v532_v1, %v596_v42  ;;  %v629_v50 = vsel %vm565_vm5, %v533_v24, %v597_v43  ;;  %v621_v55 = vsel %vm557_vm9, %v525_v20, %v589_v5 }
  0xf1   :  { %v454_v45 = vpop.permute.xlu1 %453  ;;  %730 = vmatpush.msra.mxu0 %v628_v15  ;;  %795 = vmatpush.msra.mxu1 %v629_v50  ;;  %v630_v54 = vsel %vm566_vm6, %v534_v62, %v598_v46  ;;  %v631_v44 = vsel %vm567_vm7, %v535_v14, %v599_v3 }
  0xf2   :  { %v496_v38 = vmul.f32 %v2012_v17, %v454_v45  ;;  %v497_v52 = vmul.f32 %v2014_v18, %v454_v45  ;;  %v498_v2 = vmul.f32 %v2016_v21, %v454_v45  ;;  %v499_v30 = vmul.f32 %v2018_v23, %v454_v45  ;;  %860 = vmatpush.msra.mxu2 %v630_v54 }
  0xf3   :  { %925 = vmatpush.msra.mxu3 %v631_v44 }
  0xf4   :  { %v528_v47 = vadd.f32 %v496_v38, %v420_v9  ;;  %v529_v39 = vadd.f32 %v497_v52, %v421_v11  ;;  %v530_v48 = vadd.f32 %v498_v2, %v422_v16  ;;  %v531_v0 = vadd.f32 %v499_v30, %v423_v22 }
  0xf6   :  { %vm560_vm10 = vcmp.ge.f32.partialorder %v528_v47, 0.0  ;;  %v592_v17 = vmul.f32 0.2, %v528_v47  ;;  %vm561_vm11 = vcmp.ge.f32.partialorder %v529_v39, 0.0  ;;  %v593_v18 = vmul.f32 0.2, %v529_v39 }
  0xf7   :  { %vm562_vm12 = vcmp.ge.f32.partialorder %v530_v48, 0.0  ;;  %v594_v21 = vmul.f32 0.2, %v530_v48  ;;  %vm563_vm13 = vcmp.ge.f32.partialorder %v531_v0, 0.0  ;;  %v595_v23 = vmul.f32 0.2, %v531_v0 }
  0xf8   :  { %v624_v36 = vsel %vm560_vm10, %v528_v47, %v592_v17  ;;  %v625_v19 = vsel %vm561_vm11, %v529_v39, %v593_v18 }
  0xf9   :  { %731 = vmatpush.msra.mxu0 %v624_v36  ;;  %796 = vmatpush.msra.mxu1 %v625_v19  ;;  %v626_v61 = vsel %vm562_vm12, %v530_v48, %v594_v21  ;;  %v627_v40 = vsel %vm563_vm13, %v531_v0, %v595_v23 }
  0xfa   :  { %861 = vmatpush.msra.mxu2 %v626_v61  ;;  %926 = vmatpush.msra.mxu3 %v627_v40 }
  0xfb   :  { %732 = vmatpush.msra.mxu0 %v620_v26  ;;  %797 = vmatpush.msra.mxu1 %v621_v55 }
  0xfc   :  { %862 = vmatpush.msra.mxu2 %v622_v56  ;;  %927 = vmatpush.msra.mxu3 %v623_v6 }
  0xfd   :  { %1732 = vmatmul.msk.f32.vlgmr.msra.gmra.mxu2 %vm668_vm0, %v652_v35  ;;  %1748 = vmatmul.msk.f32.vlgmr.msra.gmra.mxu3 %vm668_vm0, %v652_v35 }
  0xfe   :  { %1700 = vmatmul.msk.f32.vlgmr.msra.gmra.mxu0 %vm668_vm0, %v652_v35  ;;  %1716 = vmatmul.msk.f32.vlgmr.msra.gmra.mxu1 %vm668_vm0, %v652_v35 }
 0x105   :  { %1733 = vmatmul.msk.f32.gmra.mxu2 %vm668_vm0, %v653_v57  ;;  %1749 = vmatmul.msk.f32.gmra.mxu3 %vm668_vm0, %v653_v57 }
 0x106   :  { %1701 = vmatmul.msk.f32.gmra.mxu0 %vm668_vm0, %v653_v57  ;;  %1717 = vmatmul.msk.f32.gmra.mxu1 %vm668_vm0, %v653_v57 }
 0x10d   :  { %1734 = vmatmul.msk.f32.gmra.mxu2 %vm668_vm0, %v654_v12  ;;  %1750 = vmatmul.msk.f32.gmra.mxu3 %vm668_vm0, %v654_v12 }
 0x10e   :  { %1702 = vmatmul.msk.f32.gmra.mxu0 %vm668_vm0, %v654_v12  ;;  %1718 = vmatmul.msk.f32.gmra.mxu1 %vm668_vm0, %v654_v12 }
 0x115   :  { %1735 = vmatmul.msk.f32.gmra.mxu2 %vm668_vm0, %v655_v58  ;;  %1751 = vmatmul.msk.f32.gmra.mxu3 %vm668_vm0, %v655_v58 }
 0x116   :  { %1703 = vmatmul.msk.f32.gmra.mxu0 %vm668_vm0, %v655_v58  ;;  %1719 = vmatmul.msk.f32.gmra.mxu1 %vm668_vm0, %v655_v58 }
 0x11d   :  { %1736 = vmatmul.msk.f32.gmra.mxu2 %vm668_vm0, %v656_v34  ;;  %1752 = vmatmul.msk.f32.gmra.mxu3 %vm668_vm0, %v656_v34 }
 0x11e   :  { %1704 = vmatmul.msk.f32.gmra.mxu0 %vm668_vm0, %v656_v34  ;;  %1720 = vmatmul.msk.f32.gmra.mxu1 %vm668_vm0, %v656_v34 }
 0x125   :  { %1737 = vmatmul.msk.f32.gmra.mxu2 %vm668_vm0, %v657_v60  ;;  %1753 = vmatmul.msk.f32.gmra.mxu3 %vm668_vm0, %v657_v60 }
 0x126   :  { %1705 = vmatmul.msk.f32.gmra.mxu0 %vm668_vm0, %v657_v60  ;;  %1721 = vmatmul.msk.f32.gmra.mxu1 %vm668_vm0, %v657_v60 }
 0x12d   :  { %1738 = vmatmul.msk.f32.gmra.mxu2 %vm668_vm0, %v658_v27  ;;  %1754 = vmatmul.msk.f32.gmra.mxu3 %vm668_vm0, %v658_v27 }
 0x12e   :  { %1706 = vmatmul.msk.f32.gmra.mxu0 %vm668_vm0, %v658_v27  ;;  %1722 = vmatmul.msk.f32.gmra.mxu1 %vm668_vm0, %v658_v27 }
 0x135   :  { %1739 = vmatmul.msk.f32.gmra.mxu2 %vm668_vm0, %v659_v31  ;;  %1755 = vmatmul.msk.f32.gmra.mxu3 %vm668_vm0, %v659_v31 }
 0x136   :  { %1707 = vmatmul.msk.f32.gmra.mxu0 %vm668_vm0, %v659_v31  ;;  %1723 = vmatmul.msk.f32.gmra.mxu1 %vm668_vm0, %v659_v31 }
 0x13d   :  { %1740 = vmatmul.msk.f32.gmra.mxu2 %vm668_vm0, %v660_v25  ;;  %1756 = vmatmul.msk.f32.gmra.mxu3 %vm668_vm0, %v660_v25 }
 0x13e   :  { %1708 = vmatmul.msk.f32.gmra.mxu0 %vm668_vm0, %v660_v25  ;;  %1724 = vmatmul.msk.f32.gmra.mxu1 %vm668_vm0, %v660_v25 }
 0x145   :  { %1741 = vmatmul.msk.f32.gmra.mxu2 %vm668_vm0, %v661_v49  ;;  %1757 = vmatmul.msk.f32.gmra.mxu3 %vm668_vm0, %v661_v49 }
 0x146   :  { %1709 = vmatmul.msk.f32.gmra.mxu0 %vm668_vm0, %v661_v49  ;;  %1725 = vmatmul.msk.f32.gmra.mxu1 %vm668_vm0, %v661_v49 }
 0x14d   :  { %1742 = vmatmul.msk.f32.gmra.mxu2 %vm668_vm0, %v662_v10  ;;  %1758 = vmatmul.msk.f32.gmra.mxu3 %vm668_vm0, %v662_v10 }
 0x14e   :  { %1710 = vmatmul.msk.f32.gmra.mxu0 %vm668_vm0, %v662_v10  ;;  %1726 = vmatmul.msk.f32.gmra.mxu1 %vm668_vm0, %v662_v10 }
 0x155   :  { %1743 = vmatmul.msk.f32.gmra.mxu2 %vm668_vm0, %v663_v7  ;;  %1759 = vmatmul.msk.f32.gmra.mxu3 %vm668_vm0, %v663_v7 }
 0x156   :  { %1711 = vmatmul.msk.f32.gmra.mxu0 %vm668_vm0, %v663_v7  ;;  %1727 = vmatmul.msk.f32.gmra.mxu1 %vm668_vm0, %v663_v7 }
 0x15d   :  { %1744 = vmatmul.msk.f32.gmra.mxu2 %vm668_vm0, %v664_v29  ;;  %1760 = vmatmul.msk.f32.gmra.mxu3 %vm668_vm0, %v664_v29 }
 0x15e   :  { %1712 = vmatmul.msk.f32.gmra.mxu0 %vm668_vm0, %v664_v29  ;;  %1728 = vmatmul.msk.f32.gmra.mxu1 %vm668_vm0, %v664_v29 }
 0x165   :  { %1745 = vmatmul.msk.f32.gmra.mxu2 %vm668_vm0, %v665_v51  ;;  %1761 = vmatmul.msk.f32.gmra.mxu3 %vm668_vm0, %v665_v51 }
 0x166   :  { %1713 = vmatmul.msk.f32.gmra.mxu0 %vm668_vm0, %v665_v51  ;;  %1729 = vmatmul.msk.f32.gmra.mxu1 %vm668_vm0, %v665_v51 }
 0x16d   :  { %1746 = vmatmul.msk.f32.gmra.mxu2 %vm668_vm0, %v666_v53  ;;  %1762 = vmatmul.msk.f32.gmra.mxu3 %vm668_vm0, %v666_v53 }
 0x16e   :  { %1714 = vmatmul.msk.f32.gmra.mxu0 %vm668_vm0, %v666_v53  ;;  %1730 = vmatmul.msk.f32.gmra.mxu1 %vm668_vm0, %v666_v53 }
 0x175   :  { %1747 = vmatmul.msk.f32.gmra.mxu2 %vm668_vm0, %v667_v63  ;;  %1763 = vmatmul.msk.f32.gmra.mxu3 %vm668_vm0, %v667_v63 }
 0x176   :  { %1715 = vmatmul.msk.f32.gmra.mxu0 %vm668_vm0, %v667_v63  ;;  %1731 = vmatmul.msk.f32.gmra.mxu1 %vm668_vm0, %v667_v63 }
 0x17b   :  { %v734_v13 = vpop.f32.mrf.mxu0  ;;  %v799_v9 = vpop.f32.mrf.mxu1 }
 0x17c   :  { %v1080_v11 = vadd.f32 %v799_v9, %v734_v13  ;;  %v1209_v33 = vmul.f32 %v734_v13, %v734_v13  ;;  %v1210_v1 = vmul.f32 %v799_v9, %v799_v9 }
 0x17e   :  { %v1273_v16 = vadd.f32 %v1210_v1, %v1209_v33 }
 0x180   :  { %v864_v24 = vpop.f32.mrf.mxu2  ;;  %v929_v62 = vpop.f32.mrf.mxu3 }
 0x181   :  { %v1081_v14 = vadd.f32 %v1080_v11, %v864_v24  ;;  %v1211_v41 = vmul.f32 %v864_v24, %v864_v24  ;;  %v1212_v46 = vmul.f32 %v929_v62, %v929_v62 }
 0x183   :  { %v1082_v20 = vadd.f32 %v1081_v14, %v929_v62  ;;  %v737_v32 = vpop.f32.mrf.mxu0  ;;  %v802_v42 = vpop.f32.mrf.mxu1  ;;  %v1274_v50 = vadd.f32 %v1273_v16, %v1211_v41 }
 0x184   :  { %v1085_v43 = vadd.f32 %v802_v42, %v737_v32  ;;  %v1213_v3 = vmul.f32 %v737_v32, %v737_v32  ;;  %v1214_v15 = vmul.f32 %v802_v42, %v802_v42 }
 0x185   :  { %1083 = vadd.xlane.f32.xlu0 %v1082_v20  ;;  %v1275_v37 = vadd.f32 %v1274_v50, %v1212_v46 }
 0x186   :  { %v1278_v54 = vadd.f32 %v1214_v15, %v1213_v3 }
 0x188   :  { %v867_v22 = vpop.f32.mrf.mxu2  ;;  %v932_v28 = vpop.f32.mrf.mxu3 }
 0x189   :  { %v1086_v45 = vadd.f32 %v1085_v43, %v867_v22  ;;  %v1215_v44 = vmul.f32 %v867_v22, %v867_v22  ;;  %v1216_v4 = vmul.f32 %v932_v28, %v932_v28 }
 0x18b   :  { %v1087_v38 = vadd.f32 %v1086_v45, %v932_v28  ;;  %v740_v52 = vpop.f32.mrf.mxu0  ;;  %v805_v2 = vpop.f32.mrf.mxu1  ;;  %v1279_v48 = vadd.f32 %v1278_v54, %v1215_v44 }
 0x18c   :  { %v1090_v30 = vadd.f32 %v805_v2, %v740_v52  ;;  %v1217_v47 = vmul.f32 %v740_v52, %v740_v52  ;;  %v1218_v39 = vmul.f32 %v805_v2, %v805_v2 }
 0x18d   :  { %1276 = vadd.xlane.f32.xlu0 %v1275_v37  ;;  %1088 = vadd.xlane.f32.xlu1 %v1087_v38  ;;  %v1280_v18 = vadd.f32 %v1279_v48, %v1216_v4 }
 0x18e   :  { %v1283_v59 = vadd.f32 %v1218_v39, %v1217_v47 }
 0x190   :  { %v870_v0 = vpop.f32.mrf.mxu2  ;;  %v935_v5 = vpop.f32.mrf.mxu3 }
 0x191   :  { %v1091_v8 = vadd.f32 %v1090_v30, %v870_v0  ;;  %v1219_v17 = vmul.f32 %v870_v0, %v870_v0  ;;  %v1220_v40 = vmul.f32 %v935_v5, %v935_v5 }
 0x193   :  { %v1092_v21 = vadd.f32 %v1091_v8, %v935_v5  ;;  %v743_v23 = vpop.f32.mrf.mxu0  ;;  %v808_v36 = vpop.f32.mrf.mxu1  ;;  %v1284_v55 = vadd.f32 %v1283_v59, %v1219_v17 }
 0x194   :  { %v1221_v19 = vmul.f32 %v743_v23, %v743_v23  ;;  %v1222_v61 = vmul.f32 %v808_v36, %v808_v36  ;;  %v1095_v12 = vadd.f32 %v808_v36, %v743_v23 }
 0x195   :  { %1281 = vadd.xlane.f32.xlu1 %v1280_v18  ;;  %1093 = vadd.xlane.f32.xlu2 %v1092_v21  ;;  %v1285_v58 = vadd.f32 %v1284_v55, %v1220_v40 }
 0x196   :  { %v1288_v26 = vadd.f32 %v1222_v61, %v1221_v19 }
 0x198   :  { %v873_v35 = vpop.f32.mrf.mxu2  ;;  %v938_v56 = vpop.f32.mrf.mxu3 }
 0x199   :  { %v1223_v6 = vmul.f32 %v873_v35, %v873_v35  ;;  %v1224_v57 = vmul.f32 %v938_v56, %v938_v56  ;;  %v1096_v7 = vadd.f32 %v1095_v12, %v873_v35 }
 0x19b   :  { %v746_v34 = vpop.f32.mrf.mxu0  ;;  %v811_v60 = vpop.f32.mrf.mxu1  ;;  %v1289_v27 = vadd.f32 %v1288_v26, %v1223_v6  ;;  %v1097_v11 = vadd.f32 %v1096_v7, %v938_v56 }
 0x19c   :  { %v1225_v31 = vmul.f32 %v746_v34, %v746_v34  ;;  %v1226_v25 = vmul.f32 %v811_v60, %v811_v60  ;;  %v1100_v49 = vadd.f32 %v811_v60, %v746_v34 }
 0x19d   :  { %1286 = vadd.xlane.f32.xlu2 %v1285_v58  ;;  %v1290_v10 = vadd.f32 %v1289_v27, %v1224_v57 }
 0x19e   :  { %v1293_v29 = vadd.f32 %v1226_v25, %v1225_v31 }
 0x19f   :  { %1291 = vadd.xlane.f32.xlu0 %v1290_v10 }
 0x1a0   :  { %v876_v51 = vpop.f32.mrf.mxu2  ;;  %v941_v53 = vpop.f32.mrf.mxu3 }
 0x1a1   :  { %v1101_v63 = vadd.f32 %v1100_v49, %v876_v51  ;;  %v1227_v13 = vmul.f32 %v876_v51, %v876_v51  ;;  %v1228_v9 = vmul.f32 %v941_v53, %v941_v53 }
 0x1a3   :  { %v749_v33 = vpop.f32.mrf.mxu0  ;;  %v814_v1 = vpop.f32.mrf.mxu1  ;;  %v1294_v24 = vadd.f32 %v1293_v29, %v1227_v13  ;;  %v1102_v20 = vadd.f32 %v1101_v63, %v941_v53 }
 0x1a4   :  { %v1229_v62 = vmul.f32 %v749_v33, %v749_v33  ;;  %v1230_v14 = vmul.f32 %v814_v1, %v814_v1  ;;  %v1105_v16 = vadd.f32 %v814_v1, %v749_v33 }
 0x1a5   :  { %1098 = vadd.xlane.f32.xlu2 %v1097_v11  ;;  %v1295_v41 = vadd.f32 %v1294_v24, %v1228_v9 }
 0x1a6   :  { %v1298_v32 = vadd.f32 %v1230_v14, %v1229_v62 }
 0x1a7   :  { %1296 = vadd.xlane.f32.xlu1 %v1295_v41  ;;  %1103 = vadd.xlane.f32.xlu0 %v1102_v20 }
 0x1a8   :  { %v879_v42 = vpop.f32.mrf.mxu2  ;;  %v944_v43 = vpop.f32.mrf.mxu3 }
 0x1a9   :  { %v1106_v46 = vadd.f32 %v1105_v16, %v879_v42  ;;  %v1231_v3 = vmul.f32 %v879_v42, %v879_v42  ;;  %v1232_v15 = vmul.f32 %v944_v43, %v944_v43 }
 0x1ab   :  { %v752_v50 = vpop.f32.mrf.mxu0  ;;  %v817_v22 = vpop.f32.mrf.mxu1  ;;  %v1299_v28 = vadd.f32 %v1298_v32, %v1231_v3  ;;  %v1107_v38 = vadd.f32 %v1106_v46, %v944_v43 }
 0x1ac   :  { %v1233_v45 = vmul.f32 %v752_v50, %v752_v50  ;;  %v1234_v54 = vmul.f32 %v817_v22, %v817_v22  ;;  %v1110_v44 = vadd.f32 %v817_v22, %v752_v50 }
 0x1ad   :  { %v1300_v37 = vadd.f32 %v1299_v28, %v1232_v15 }
 0x1ae   :  { %v1303_v52 = vadd.f32 %v1234_v54, %v1233_v45 }
 0x1af   :  { %1301 = vadd.xlane.f32.xlu2 %v1300_v37  ;;  %1108 = vadd.xlane.f32.xlu1 %v1107_v38 }
 0x1b0   :  { %v882_v2 = vpop.f32.mrf.mxu2  ;;  %v947_v30 = vpop.f32.mrf.mxu3 }
 0x1b1   :  { %v1111_v4 = vadd.f32 %v1110_v44, %v882_v2  ;;  %v1235_v47 = vmul.f32 %v882_v2, %v882_v2  ;;  %v1236_v39 = vmul.f32 %v947_v30, %v947_v30 }
 0x1b3   :  { %v755_v48 = vpop.f32.mrf.mxu0  ;;  %v820_v0 = vpop.f32.mrf.mxu1  ;;  %v1304_v5 = vadd.f32 %v1303_v52, %v1235_v47  ;;  %v1112_v21 = vadd.f32 %v1111_v4, %v947_v30 }
 0x1b4   :  { %v1237_v8 = vmul.f32 %v755_v48, %v755_v48  ;;  %v1238_v59 = vmul.f32 %v820_v0, %v820_v0  ;;  %v1115_v17 = vadd.f32 %v820_v0, %v755_v48 }
 0x1b5   :  { %v1305_v18 = vadd.f32 %v1304_v5, %v1236_v39 }
 0x1b6   :  { %v1308_v23 = vadd.f32 %v1238_v59, %v1237_v8 }
 0x1b7   :  { %1306 = vadd.xlane.f32.xlu0 %v1305_v18  ;;  %1113 = vadd.xlane.f32.xlu2 %v1112_v21 }
 0x1b8   :  { %v885_v36 = vpop.f32.mrf.mxu2  ;;  %v950_v19 = vpop.f32.mrf.mxu3 }
 0x1b9   :  { %v1116_v61 = vadd.f32 %v1115_v17, %v885_v36  ;;  %v1239_v40 = vmul.f32 %v885_v36, %v885_v36  ;;  %v1240_v26 = vmul.f32 %v950_v19, %v950_v19 }
 0x1bb   :  { %v758_v55 = vpop.f32.mrf.mxu0  ;;  %v823_v35 = vpop.f32.mrf.mxu1  ;;  %v1309_v56 = vadd.f32 %v1308_v23, %v1239_v40  ;;  %v1117_v34 = vadd.f32 %v1116_v61, %v950_v19  ;;  %v1837_v61 = vmov 0.0  }
 0x1bc   :  { %v1241_v6 = vmul.f32 %v758_v55, %v758_v55  ;;  %v1242_v57 = vmul.f32 %v823_v35, %v823_v35  ;;  %v1120_v12 = vadd.f32 %v823_v35, %v758_v55  ;;  %24 = vst.msk [vmem:[%s3044_s4] sm:$0xff] %vm23_vm1, %v1837_v61 }
 0x1bd   :  { %v1310_v58 = vadd.f32 %v1309_v56, %v1240_v26  ;;  %25 = vst.msk [vmem:[%s3044_s4 + $0x8] sm:$0xff] %vm23_vm1, %v1837_v61 }
 0x1be   :  { %v1313_v60 = vadd.f32 %v1242_v57, %v1241_v6  ;;  %26 = vst.msk [vmem:[%s3044_s4 + $0x10] sm:$0xff] %vm23_vm1, %v1837_v61 }
 0x1bf   :  { %1311 = vadd.xlane.f32.xlu1 %v1310_v58  ;;  %1118 = vadd.xlane.f32.xlu0 %v1117_v34  ;;  %27 = vst.msk [vmem:[%s3044_s4 + $0x18] sm:$0xff] %vm23_vm1, %v1837_v61 }
 0x1c0   :  { %v888_v27 = vpop.f32.mrf.mxu2  ;;  %v953_v31 = vpop.f32.mrf.mxu3  ;;  %28 = vst.msk [vmem:[%s3044_s4 + $0x20] sm:$0xff] %vm23_vm1, %v1837_v61 }
 0x1c1   :  { %v1121_v25 = vadd.f32 %v1120_v12, %v888_v27  ;;  %v1243_v49 = vmul.f32 %v888_v27, %v888_v27  ;;  %v1244_v10 = vmul.f32 %v953_v31, %v953_v31  ;;  %29 = vst.msk [vmem:[%s3044_s4 + $0x28] sm:$0xff] %vm23_vm1, %v1837_v61 }
 0x1c2   :  { %30 = vst.msk [vmem:[%s3044_s4 + $0x30] sm:$0xff] %vm23_vm1, %v1837_v61 }
 0x1c3   :  { %v761_v7 = vpop.f32.mrf.mxu0  ;;  %v826_v29 = vpop.f32.mrf.mxu1  ;;  %v1314_v51 = vadd.f32 %v1313_v60, %v1243_v49  ;;  %v1122_v11 = vadd.f32 %v1121_v25, %v953_v31  ;;  %31 = vst.msk [vmem:[%s3044_s4 + $0x38] sm:$0xff] %vm23_vm1, %v1837_v61 }
 0x1c4   :  { %v1245_v53 = vmul.f32 %v761_v7, %v761_v7  ;;  %v1246_v63 = vmul.f32 %v826_v29, %v826_v29  ;;  %v1125_v13 = vadd.f32 %v826_v29, %v761_v7  ;;  %32 = vst.msk [vmem:[%s3044_s4 + $0x40] sm:$0xff] %vm23_vm1, %v1837_v61 }
 0x1c5   :  { %v1315_v9 = vadd.f32 %v1314_v51, %v1244_v10  ;;  %33 = vst.msk [vmem:[%s3044_s4 + $0x48] sm:$0xff] %vm23_vm1, %v1837_v61 }
 0x1c6   :  { %v1318_v33 = vadd.f32 %v1246_v63, %v1245_v53  ;;  %34 = vst.msk [vmem:[%s3044_s4 + $0x50] sm:$0xff] %vm23_vm1, %v1837_v61 }
 0x1c7   :  { %1316 = vadd.xlane.f32.xlu2 %v1315_v9  ;;  %1123 = vadd.xlane.f32.xlu1 %v1122_v11  ;;  %35 = vst.msk [vmem:[%s3044_s4 + $0x58] sm:$0xff] %vm23_vm1, %v1837_v61 }
 0x1c8   :  { %v891_v1 = vpop.f32.mrf.mxu2  ;;  %v956_v24 = vpop.f32.mrf.mxu3  ;;  %36 = vst.msk [vmem:[%s3044_s4 + $0x60] sm:$0xff] %vm23_vm1, %v1837_v61 }
 0x1c9   :  { %v1126_v62 = vadd.f32 %v1125_v13, %v891_v1  ;;  %v1247_v14 = vmul.f32 %v891_v1, %v891_v1  ;;  %v1248_v16 = vmul.f32 %v956_v24, %v956_v24  ;;  %37 = vst.msk [vmem:[%s3044_s4 + $0x68] sm:$0xff] %vm23_vm1, %v1837_v61 }
 0x1ca   :  { %38 = vst.msk [vmem:[%s3044_s4 + $0x70] sm:$0xff] %vm23_vm1, %v1837_v61 }
 0x1cb   :  { %v764_v41 = vpop.f32.mrf.mxu0  ;;  %v829_v20 = vpop.f32.mrf.mxu1  ;;  %v1319_v32 = vadd.f32 %v1318_v33, %v1247_v14  ;;  %v1127_v15 = vadd.f32 %v1126_v62, %v956_v24  ;;  %39 = vst.msk [vmem:[%s3044_s4 + $0x78] sm:$0xff] %vm23_vm1, %v1837_v61 }
 0x1cc   :  { %v1249_v42 = vmul.f32 %v764_v41, %v764_v41  ;;  %v1250_v43 = vmul.f32 %v829_v20, %v829_v20  ;;  %v1130_v46 = vadd.f32 %v829_v20, %v764_v41  ;;  %40 = vst.msk [vmem:[%s3045_s5] sm:$0xff] %vm23_vm1, %v1837_v61 }
 0x1cd   :  { %v1320_v3 = vadd.f32 %v1319_v32, %v1248_v16  ;;  %41 = vst.msk [vmem:[%s3045_s5 + $0x8] sm:$0xff] %vm23_vm1, %v1837_v61 }
 0x1ce   :  { %v1323_v50 = vadd.f32 %v1250_v43, %v1249_v42  ;;  %42 = vst.msk [vmem:[%s3045_s5 + $0x10] sm:$0xff] %vm23_vm1, %v1837_v61 }
 0x1cf   :  { %1321 = vadd.xlane.f32.xlu0 %v1320_v3  ;;  %1128 = vadd.xlane.f32.xlu2 %v1127_v15  ;;  %43 = vst.msk [vmem:[%s3045_s5 + $0x18] sm:$0xff] %vm23_vm1, %v1837_v61  ;;  %v1064_v3 = vld [vmem:[%s3044_s4] sm:$0xff] }
 0x1d0   :  { %v894_v22 = vpop.f32.mrf.mxu2  ;;  %v959_v28 = vpop.f32.mrf.mxu3  ;;  %44 = vst.msk [vmem:[%s3045_s5 + $0x20] sm:$0xff] %vm23_vm1, %v1837_v61 }
 0x1d1   :  { %v1131_v45 = vadd.f32 %v1130_v46, %v894_v22  ;;  %v1251_v54 = vmul.f32 %v894_v22, %v894_v22  ;;  %v1252_v44 = vmul.f32 %v959_v28, %v959_v28  ;;  %45 = vst.msk [vmem:[%s3045_s5 + $0x28] sm:$0xff] %vm23_vm1, %v1837_v61 }
 0x1d2   :  { %46 = vst.msk [vmem:[%s3045_s5 + $0x30] sm:$0xff] %vm23_vm1, %v1837_v61 }
 0x1d3   :  { %v767_v37 = vpop.f32.mrf.mxu0  ;;  %v832_v38 = vpop.f32.mrf.mxu1  ;;  %v1324_v52 = vadd.f32 %v1323_v50, %v1251_v54  ;;  %v1132_v39 = vadd.f32 %v1131_v45, %v959_v28  ;;  %47 = vst.msk [vmem:[%s3045_s5 + $0x38] sm:$0xff] %vm23_vm1, %v1837_v61 }
 0x1d4   :  { %v1253_v2 = vmul.f32 %v767_v37, %v767_v37  ;;  %v1254_v30 = vmul.f32 %v832_v38, %v832_v38  ;;  %v1135_v4 = vadd.f32 %v832_v38, %v767_v37  ;;  %48 = vst.msk [vmem:[%s3045_s5 + $0x40] sm:$0xff] %vm23_vm1, %v1837_v61 }
 0x1d5   :  { %v1325_v47 = vadd.f32 %v1324_v52, %v1252_v44  ;;  %49 = vst.msk [vmem:[%s3045_s5 + $0x48] sm:$0xff] %vm23_vm1, %v1837_v61 }
 0x1d6   :  { %v1328_v48 = vadd.f32 %v1254_v30, %v1253_v2  ;;  %50 = vst.msk [vmem:[%s3045_s5 + $0x50] sm:$0xff] %vm23_vm1, %v1837_v61 }
 0x1d7   :  { %1326 = vadd.xlane.f32.xlu1 %v1325_v47  ;;  %1133 = vadd.xlane.f32.xlu0 %v1132_v39  ;;  %51 = vst.msk [vmem:[%s3045_s5 + $0x58] sm:$0xff] %vm23_vm1, %v1837_v61 }
 0x1d8   :  { %v897_v0 = vpop.f32.mrf.mxu2  ;;  %v962_v5 = vpop.f32.mrf.mxu3  ;;  %52 = vst.msk [vmem:[%s3045_s5 + $0x60] sm:$0xff] %vm23_vm1, %v1837_v61 }
 0x1d9   :  { %v1136_v8 = vadd.f32 %v1135_v4, %v897_v0  ;;  %v1255_v59 = vmul.f32 %v897_v0, %v897_v0  ;;  %v1256_v17 = vmul.f32 %v962_v5, %v962_v5  ;;  %53 = vst.msk [vmem:[%s3045_s5 + $0x68] sm:$0xff] %vm23_vm1, %v1837_v61 }
 0x1da   :  { %54 = vst.msk [vmem:[%s3045_s5 + $0x70] sm:$0xff] %vm23_vm1, %v1837_v61 }
 0x1db   :  { %v770_v18 = vpop.f32.mrf.mxu0  ;;  %v835_v21 = vpop.f32.mrf.mxu1  ;;  %v1329_v23 = vadd.f32 %v1328_v48, %v1255_v59  ;;  %v1137_v55 = vadd.f32 %v1136_v8, %v962_v5  ;;  %55 = vst.msk [vmem:[%s3045_s5 + $0x78] sm:$0xff] %vm23_vm1, %v1837_v61  ;;  %v1193_v5 = vld [vmem:[%s3045_s5] sm:$0xff]  ;;  %v1065_v8 = vld [vmem:[%s3044_s4 + $0x8] sm:$0xff] }
 0x1dc   :  { %v1257_v36 = vmul.f32 %v770_v18, %v770_v18  ;;  %v1258_v19 = vmul.f32 %v835_v21, %v835_v21  ;;  %v1140_v40 = vadd.f32 %v835_v21, %v770_v18 }
 0x1dd   :  { %v1330_v26 = vadd.f32 %v1329_v23, %v1256_v17 }
 0x1de   :  { %v1333_v35 = vadd.f32 %v1258_v19, %v1257_v36 }
 0x1df   :  { %1331 = vadd.xlane.f32.xlu2 %v1330_v26  ;;  %1138 = vadd.xlane.f32.xlu1 %v1137_v55  ;;  %v1194_v26 = vld [vmem:[%s3045_s5 + $0x8] sm:$0xff]  ;;  %v1066_v55 = vld [vmem:[%s3044_s4 + $0x10] sm:$0xff] }
 0x1e0   :  { %v900_v56 = vpop.f32.mrf.mxu2  ;;  %v965_v6 = vpop.f32.mrf.mxu3 }
 0x1e1   :  { %v1141_v57 = vadd.f32 %v1140_v40, %v900_v56  ;;  %v1259_v12 = vmul.f32 %v900_v56, %v900_v56  ;;  %v1260_v58 = vmul.f32 %v965_v6, %v965_v6 }
 0x1e3   :  { %v773_v34 = vpop.f32.mrf.mxu0  ;;  %v838_v60 = vpop.f32.mrf.mxu1  ;;  %v1334_v27 = vadd.f32 %v1333_v35, %v1259_v12  ;;  %v1142_v49 = vadd.f32 %v1141_v57, %v965_v6 }
 0x1e4   :  { %v1145_v31 = vadd.f32 %v838_v60, %v773_v34  ;;  %v1261_v9 = vmul.f32 %v773_v34, %v773_v34  ;;  %v1262_v11 = vmul.f32 %v838_v60, %v838_v60 }
 0x1e5   :  { %v1335_v25 = vadd.f32 %v1334_v27, %v1260_v58 }
 0x1e6   :  { %v1338_v62 = vadd.f32 %v1262_v11, %v1261_v9 }
 0x1e7   :  { %1336 = vadd.xlane.f32.xlu0 %v1335_v25  ;;  %1143 = vadd.xlane.f32.xlu2 %v1142_v49  ;;  %v1195_v25 = vld [vmem:[%s3045_s5 + $0x10] sm:$0xff] }
 0x1e8   :  { %v903_v10 = vpop.f32.mrf.mxu2  ;;  %v968_v7 = vpop.f32.mrf.mxu3 }
 0x1e9   :  { %v1146_v29 = vadd.f32 %v1145_v31, %v903_v10  ;;  %v1263_v14 = vmul.f32 %v903_v10, %v903_v10  ;;  %v1264_v46 = vmul.f32 %v968_v7, %v968_v7 }
 0x1eb   :  { %v776_v51 = vpop.f32.mrf.mxu0  ;;  %v841_v53 = vpop.f32.mrf.mxu1  ;;  %v1147_v13 = vadd.f32 %v1146_v29, %v968_v7  ;;  %v1339_v15 = vadd.f32 %v1338_v62, %v1263_v14  ;;  %v1196_v7 = vld [vmem:[%s3045_s5 + $0x18] sm:$0xff] }
 0x1ec   :  { %v1150_v63 = vadd.f32 %v841_v53, %v776_v51  ;;  %v1265_v50 = vmul.f32 %v776_v51, %v776_v51  ;;  %v1266_v22 = vmul.f32 %v841_v53, %v841_v53 }
 0x1ed   :  { %v1340_v30 = vadd.f32 %v1339_v15, %v1264_v46 }
 0x1ee   :  { %v1343_v4 = vadd.f32 %v1266_v22, %v1265_v50 }
 0x1ef   :  { %1148 = vadd.xlane.f32.xlu0 %v1147_v13 }
 0x1f0   :  { %v906_v33 = vpop.f32.mrf.mxu2  ;;  %v971_v1 = vpop.f32.mrf.mxu3 }
 0x1f1   :  { %v1151_v24 = vadd.f32 %v1150_v63, %v906_v33  ;;  %v1267_v47 = vmul.f32 %v906_v33, %v906_v33  ;;  %v1268_v59 = vmul.f32 %v971_v1, %v971_v1 }
 0x1f3   :  { %v1152_v16 = vadd.f32 %v1151_v24, %v971_v1  ;;  %v779_v41 = vpop.f32.mrf.mxu0  ;;  %v844_v20 = vpop.f32.mrf.mxu1  ;;  %v1344_v17 = vadd.f32 %v1343_v4, %v1267_v47  ;;  %v1067_v24 = vld [vmem:[%s3044_s4 + $0x18] sm:$0xff]  ;;  %v1198_v4 = vld [vmem:[%s3045_s5 + $0x28] sm:$0xff] }
 0x1f4   :  { %v1269_v32 = vmul.f32 %v779_v41, %v779_v41  ;;  %v1270_v42 = vmul.f32 %v844_v20, %v844_v20  ;;  %v1155_v43 = vadd.f32 %v844_v20, %v779_v41  ;;  %v1197_v20 = vld [vmem:[%s3045_s5 + $0x20] sm:$0xff]  ;;  %v1069_v47 = vld [vmem:[%s3044_s4 + $0x28] sm:$0xff] }
 0x1f5   :  { %1153 = vadd.xlane.f32.xlu1 %v1152_v16  ;;  %v1345_v40 = vadd.f32 %v1344_v17, %v1268_v59 }
 0x1f6   :  { %v1348_v28 = vadd.f32 %v1270_v42, %v1269_v32  ;;  %v1068_v32 = vld [vmem:[%s3044_s4 + $0x20] sm:$0xff] }
 0x1f8   :  { %v909_v45 = vpop.f32.mrf.mxu2  ;;  %v1084_v54 = vpop.xlane.xlu0 %1083 }
 0x1f9   :  { %v1156_v44 = vadd.f32 %v1155_v43, %v909_v45  ;;  %v1271_v37 = vmul.f32 %v909_v45, %v909_v45  ;;  %v1160_v38 = vadd.f32 %v1084_v54, %v1064_v3  ;;  %v974_v52 = vpop.f32.mrf.mxu3 }
 0x1fa   :  { %v1272_v2 = vmul.f32 %v974_v52, %v974_v52 }
 0x1fb   :  { %v1349_v39 = vadd.f32 %v1348_v28, %v1271_v37  ;;  %1177 = vst.msk [vmem:[%s3044_s4] sm:$0xff] %vm23_vm1, %v1160_v38  ;;  %v1157_v48 = vadd.f32 %v1156_v44, %v974_v52 }
 0x1fd   :  { %1341 = vadd.xlane.f32.xlu1 %v1340_v30  ;;  %1158 = vadd.xlane.f32.xlu2 %v1157_v48  ;;  %v1350_v0 = vadd.f32 %v1349_v39, %v1272_v2 }
 0x1ff   :  { %1351 = vadd.xlane.f32.xlu0 %v1350_v0 }
 0x200   :  { %v1277_v18 = vpop.xlane.xlu0 %1276  ;;  %v1089_v21 = vpop.xlane.xlu1 %1088 }
 0x201   :  { %v1353_v23 = vadd.f32 %v1277_v18, %v1193_v5  ;;  %v1161_v36 = vadd.f32 %v1089_v21, %v1065_v8 }
 0x202   :  { %v1388_v19 = vld [vmem:[%s3044_s4] sm:$0xff] }
 0x203   :  { %v1404_v61 = vmul.f32 0.001953125, %v1388_v19  ;;  %1369 = vst.msk [vmem:[%s3045_s5] sm:$0xff] %vm23_vm1, %v1353_v23 }
 0x204   :  { %1178 = vst.msk [vmem:[%s3044_s4 + $0x8] sm:$0xff] %vm23_vm1, %v1161_v36 }
 0x205   :  { %1484 = vst.msk [vmem:[%s3044_s4] sm:$0xff] %vm23_vm1, %v1404_v61  ;;  %1346 = vadd.xlane.f32.xlu2 %v1345_v40  ;;  %v1452_v58 = vmul.f32 %v1404_v61, %v1404_v61 }
 0x208   :  { %v1282_v35 = vpop.xlane.xlu1 %1281  ;;  %v1094_v56 = vpop.xlane.xlu2 %1093 }
 0x209   :  { %v1354_v6 = vadd.f32 %v1282_v35, %v1194_v26  ;;  %v1162_v57 = vadd.f32 %v1094_v56, %v1066_v55 }
 0x20a   :  { %v1420_v12 = vld [vmem:[%s3045_s5] sm:$0xff] }
 0x20b   :  { %v1436_v34 = vmul.f32 0.001953125, %v1420_v12  ;;  %v1389_v60 = vld [vmem:[%s3044_s4 + $0x8] sm:$0xff]  ;;  %1370 = vst.msk [vmem:[%s3045_s5 + $0x8] sm:$0xff] %vm23_vm1, %v1354_v6 }
 0x20c   :  { %v1405_v27 = vmul.f32 0.001953125, %v1389_v60  ;;  %1179 = vst.msk [vmem:[%s3044_s4 + $0x10] sm:$0xff] %vm23_vm1, %v1162_v57  ;;  %v1070_v60 = vld [vmem:[%s3044_s4 + $0x30] sm:$0xff] }
 0x20d   :  { %v1468_v31 = vsub.f32 %v1436_v34, %v1452_v58  ;;  %v1199_v34 = vld [vmem:[%s3045_s5 + $0x30] sm:$0xff] }
 0x20e   :  { %1485 = vst.msk [vmem:[%s3044_s4 + $0x8] sm:$0xff] %vm23_vm1, %v1405_v27  ;;  %v1453_v63 = vmul.f32 %v1405_v27, %v1405_v27 }
 0x20f   :  { %v1500_v49 = vadd.f32 1e-05, %v1468_v31 }
 0x210   :  { %v1287_v10 = vpop.xlane.xlu2 %1286 }
 0x211   :  { %1801 = vrsqrt.f32 %v1500_v49  ;;  %v1355_v29 = vadd.f32 %v1287_v10, %v1195_v25  ;;  %vm1522_vm3 = vweird.f32 %v1500_v49 }
 0x212   :  { %v1421_v51 = vld [vmem:[%s3045_s5 + $0x8] sm:$0xff]  ;;  %v1292_v53 = vpop.xlane.xlu0 %1291 }
 0x213   :  { %v1437_v13 = vmul.f32 0.001953125, %v1421_v51  ;;  %v1390_v9 = vld [vmem:[%s3044_s4 + $0x10] sm:$0xff]  ;;  %1371 = vst.msk [vmem:[%s3045_s5 + $0x10] sm:$0xff] %vm23_vm1, %v1355_v29  ;;  %v1356_v11 = vadd.f32 %v1292_v53, %v1196_v7 }
 0x214   :  { %v1406_v33 = vmul.f32 0.001953125, %v1390_v9 }
 0x215   :  { %v1469_v1 = vsub.f32 %v1437_v13, %v1453_v63  ;;  %1372 = vst.msk [vmem:[%s3045_s5 + $0x18] sm:$0xff] %vm23_vm1, %v1356_v11 }
 0x216   :  { %1486 = vst.msk [vmem:[%s3044_s4 + $0x10] sm:$0xff] %vm23_vm1, %v1406_v33  ;;  %v1454_v50 = vmul.f32 %v1406_v33, %v1406_v33 }
 0x217   :  { %v1802_v62 = vpop.eup %1801  ;;  %v1501_v14 = vadd.f32 1e-05, %v1469_v1 }
 0x218   :  { %v1517_v16 = vmul.f32 %v1802_v62, %v1500_v49  ;;  %v1099_v41 = vpop.xlane.xlu2 %1098  ;;  %vm1523_vm2 = vweird.f32 %v1802_v62 }
 0x219   :  { %1803 = vrsqrt.f32 %v1501_v14  ;;  %v1163_v42 = vadd.f32 %v1099_v41, %v1067_v24  ;;  %vm1524_vm4 = vmor %vm1522_vm3, %vm1523_vm2  ;;  %vm1532_vm6 = vweird.f32 %v1501_v14  ;;  %v1200_v24 = vld [vmem:[%s3045_s5 + $0x38] sm:$0xff] }
 0x21a   :  { %v1518_v43 = vmul.f32 %v1802_v62, %v1517_v16  ;;  %v1422_v46 = vld [vmem:[%s3045_s5 + $0x10] sm:$0xff]  ;;  %v1297_v3 = vpop.xlane.xlu1 %1296  ;;  %v1104_v15 = vpop.xlane.xlu0 %1103 }
 0x21b   :  { %v1438_v22 = vmul.f32 0.001953125, %v1422_v46  ;;  %1180 = vst.msk [vmem:[%s3044_s4 + $0x18] sm:$0xff] %vm23_vm1, %v1163_v42  ;;  %v1357_v28 = vadd.f32 %v1297_v3, %v1197_v20  ;;  %v1164_v45 = vadd.f32 %v1104_v15, %v1068_v32 }
 0x21c   :  { %v1519_v54 = vmul.f32 0.5, %v1518_v43  ;;  %v1423_v0 = vld [vmem:[%s3045_s5 + $0x18] sm:$0xff] }
 0x21d   :  { %v1470_v44 = vsub.f32 %v1438_v22, %v1454_v50  ;;  %1373 = vst.msk [vmem:[%s3045_s5 + $0x20] sm:$0xff] %vm23_vm1, %v1357_v28  ;;  %v1439_v36 = vmul.f32 0.001953125, %v1423_v0 }
 0x21e   :  { %v1520_v37 = vsub.f32 1.5, %v1519_v54  ;;  %1181 = vst.msk [vmem:[%s3044_s4 + $0x20] sm:$0xff] %vm23_vm1, %v1164_v45 }
 0x21f   :  { %v1804_v38 = vpop.eup %1803  ;;  %v2661_v52 = vadd.f32 1e-05, %v1470_v44 }
 0x220   :  { %v1521_v2 = vmul.f32 %v1802_v62, %v1520_v37  ;;  %v1527_v30 = vmul.f32 %v1804_v38, %v1501_v14  ;;  %vm1533_vm5 = vweird.f32 %v1804_v38 }
 0x221   :  { %1805 = vrsqrt.f32 %v2661_v52  ;;  %vm1534_vm7 = vmor %vm1532_vm6, %vm1533_vm5  ;;  %vm1542_vm9 = vweird.f32 %v2661_v52 }
 0x222   :  { %v1525_v39 = vsel %vm1524_vm4, %v1802_v62, %v1521_v2  ;;  %v1528_v48 = vmul.f32 %v1804_v38, %v1527_v30  ;;  %v1391_v5 = vld [vmem:[%s3044_s4 + $0x18] sm:$0xff]  ;;  %v1302_v8 = vpop.xlane.xlu2 %1301  ;;  %v1109_v59 = vpop.xlane.xlu1 %1108 }
 0x223   :  { %1676 = vst.msk [vmem:[%s3045_s5] sm:$0xff] %vm23_vm1, %v1525_v39  ;;  %v1407_v17 = vmul.f32 0.001953125, %v1391_v5  ;;  %v1358_v18 = vadd.f32 %v1302_v8, %v1198_v4  ;;  %v1165_v21 = vadd.f32 %v1109_v59, %v1069_v47  ;;  %v1071_v62 = vld [vmem:[%s3044_s4 + $0x38] sm:$0xff]  ;;  %v1201_v47 = vld [vmem:[%s3045_s5 + $0x40] sm:$0xff] }
 0x224   :  { %v1529_v23 = vmul.f32 0.5, %v1528_v48  ;;  %v1424_v61 = vld [vmem:[%s3045_s5 + $0x20] sm:$0xff] }
 0x225   :  { %v1455_v19 = vmul.f32 %v1407_v17, %v1407_v17  ;;  %1487 = vst.msk [vmem:[%s3044_s4 + $0x18] sm:$0xff] %vm23_vm1, %v1407_v17  ;;  %v1392_v40 = vld [vmem:[%s3044_s4 + $0x20] sm:$0xff]  ;;  %v1440_v12 = vmul.f32 0.001953125, %v1424_v61 }
 0x226   :  { %v1530_v26 = vsub.f32 1.5, %v1529_v23  ;;  %v1408_v55 = vmul.f32 0.001953125, %v1392_v40  ;;  %1374 = vst.msk [vmem:[%s3045_s5 + $0x28] sm:$0xff] %vm23_vm1, %v1358_v18  ;;  %v1072_v39 = vld [vmem:[%s3044_s4 + $0x40] sm:$0xff] }
 0x227   :  { %v1806_v35 = vpop.eup %1805  ;;  %v1471_v56 = vsub.f32 %v1439_v36, %v1455_v19  ;;  %1182 = vst.msk [vmem:[%s3044_s4 + $0x28] sm:$0xff] %vm23_vm1, %v1165_v21 }
 0x228   :  { %v1531_v6 = vmul.f32 %v1804_v38, %v1530_v26  ;;  %v1537_v57 = vmul.f32 %v1806_v35, %v2661_v52  ;;  %v1456_v58 = vmul.f32 %v1408_v55, %v1408_v55  ;;  %1488 = vst.msk [vmem:[%s3044_s4 + $0x20] sm:$0xff] %vm23_vm1, %v1408_v55  ;;  %vm1543_vm8 = vweird.f32 %v1806_v35 }
 0x229   :  { %v1503_v27 = vadd.f32 1e-05, %v1471_v56  ;;  %vm1544_vm10 = vmor %vm1542_vm9, %vm1543_vm8 }
 0x22a   :  { %v1535_v31 = vsel %vm1534_vm7, %v1804_v38, %v1531_v6  ;;  %v1538_v25 = vmul.f32 %v1806_v35, %v1537_v57  ;;  %v1472_v49 = vsub.f32 %v1440_v12, %v1456_v58  ;;  %v1307_v10 = vpop.xlane.xlu0 %1306  ;;  %v1114_v7 = vpop.xlane.xlu2 %1113  ;;  %v1202_v57 = vld [vmem:[%s3045_s5 + $0x48] sm:$0xff] }
 0x22b   :  { %1677 = vst.msk [vmem:[%s3045_s5 + $0x8] sm:$0xff] %vm23_vm1, %v1535_v31  ;;  %1807 = vrsqrt.f32 %v1503_v27  ;;  %v1359_v29 = vadd.f32 %v1307_v10, %v1199_v34  ;;  %v1166_v51 = vadd.f32 %v1114_v7, %v1070_v60  ;;  %vm1552_vm12 = vweird.f32 %v1503_v27  ;;  %v1073_v12 = vld [vmem:[%s3044_s4 + $0x48] sm:$0xff] }
 0x22c   :  { %v1539_v53 = vmul.f32 0.5, %v1538_v25  ;;  %v2713_v63 = vadd.f32 1e-05, %v1472_v49 }
 0x22d   :  { %1375 = vst.msk [vmem:[%s3045_s5 + $0x30] sm:$0xff] %vm23_vm1, %v1359_v29  ;;  %v1425_v9 = vld [vmem:[%s3045_s5 + $0x28] sm:$0xff] }
 0x22e   :  { %v1540_v13 = vsub.f32 1.5, %v1539_v53  ;;  %1809 = vrsqrt.f32 %v2713_v63  ;;  %v1393_v11 = vld [vmem:[%s3044_s4 + $0x28] sm:$0xff]  ;;  %1183 = vst.msk [vmem:[%s3044_s4 + $0x30] sm:$0xff] %vm23_vm1, %v1166_v51  ;;  %v1441_v16 = vmul.f32 0.001953125, %v1425_v9  ;;  %vm1562_vm15 = vweird.f32 %v2713_v63 }
 0x22f   :  { %v1409_v33 = vmul.f32 0.001953125, %v1393_v11 }
 0x230   :  { %v1541_v1 = vmul.f32 %v1806_v35, %v1540_v13 }
 0x231   :  { %v1808_v14 = vpop.eup %1807  ;;  %v1457_v41 = vmul.f32 %v1409_v33, %v1409_v33  ;;  %1489 = vst.msk [vmem:[%s3044_s4 + $0x28] sm:$0xff] %vm23_vm1, %v1409_v33 }
 0x232   :  { %v1545_v20 = vsel %vm1544_vm10, %v1806_v35, %v1541_v1  ;;  %v1547_v32 = vmul.f32 %v1808_v14, %v1503_v27  ;;  %v1312_v42 = vpop.xlane.xlu1 %1311  ;;  %v1119_v43 = vpop.xlane.xlu0 %1118  ;;  %vm1553_vm11 = vweird.f32 %v1808_v14 }
 0x233   :  { %1678 = vst.msk [vmem:[%s3045_s5 + $0x10] sm:$0xff] %vm23_vm1, %v1545_v20  ;;  %v1473_v46 = vsub.f32 %v1441_v16, %v1457_v41  ;;  %v1360_v3 = vadd.f32 %v1312_v42, %v1200_v24  ;;  %v1167_v15 = vadd.f32 %v1119_v43, %v1071_v62  ;;  %vm1554_vm13 = vmor %vm1552_vm12, %vm1553_vm11  ;;  %v1203_v24 = vld [vmem:[%s3045_s5 + $0x50] sm:$0xff] }
 0x234   :  { %v1810_v50 = vpop.eup %1809  ;;  %v1548_v22 = vmul.f32 %v1808_v14, %v1547_v32  ;;  %v1426_v54 = vld [vmem:[%s3045_s5 + $0x30] sm:$0xff] }
 0x235   :  { %v1557_v28 = vmul.f32 %v1810_v50, %v2713_v63  ;;  %v2746_v45 = vadd.f32 1e-05, %v1473_v46  ;;  %v1394_v44 = vld [vmem:[%s3044_s4 + $0x30] sm:$0xff]  ;;  %1376 = vst.msk [vmem:[%s3045_s5 + $0x38] sm:$0xff] %vm23_vm1, %v1360_v3  ;;  %v1442_v30 = vmul.f32 0.001953125, %v1426_v54  ;;  %vm1563_vm14 = vweird.f32 %v1810_v50 }
 0x236   :  { %v1549_v37 = vmul.f32 0.5, %v1548_v22  ;;  %v1410_v38 = vmul.f32 0.001953125, %v1394_v44  ;;  %1184 = vst.msk [vmem:[%s3044_s4 + $0x38] sm:$0xff] %vm23_vm1, %v1167_v15  ;;  %vm1564_vm0 = vmor %vm1562_vm15, %vm1563_vm14  ;;  %v1074_v62 = vld [vmem:[%s3044_s4 + $0x50] sm:$0xff] }
 0x237   :  { %v1558_v52 = vmul.f32 %v1810_v50, %v1557_v28  ;;  %1811 = vrsqrt.f32 %v2746_v45  ;;  %vm1572_vm3 = vweird.f32 %v2746_v45 }
 0x238   :  { %v1550_v2 = vsub.f32 1.5, %v1549_v37  ;;  %v1458_v4 = vmul.f32 %v1410_v38, %v1410_v38  ;;  %1490 = vst.msk [vmem:[%s3044_s4 + $0x30] sm:$0xff] %vm23_vm1, %v1410_v38 }
 0x239   :  { %v1559_v48 = vmul.f32 0.5, %v1558_v52 }
 0x23a   :  { %v1551_v0 = vmul.f32 %v1808_v14, %v1550_v2  ;;  %v1474_v5 = vsub.f32 %v1442_v30, %v1458_v4  ;;  %v1317_v8 = vpop.xlane.xlu2 %1316  ;;  %v1124_v59 = vpop.xlane.xlu1 %1123  ;;  %v1204_v30 = vld [vmem:[%s3045_s5 + $0x58] sm:$0xff] }
 0x23b   :  { %v1560_v17 = vsub.f32 1.5, %v1559_v48  ;;  %v1361_v18 = vadd.f32 %v1317_v8, %v1201_v47  ;;  %v1168_v21 = vadd.f32 %v1124_v59, %v1072_v39  ;;  %v1075_v4 = vld [vmem:[%s3044_s4 + $0x58] sm:$0xff] }
 0x23c   :  { %v1555_v23 = vsel %vm1554_vm13, %v1808_v14, %v1551_v0  ;;  %v2773_v36 = vadd.f32 1e-05, %v1474_v5  ;;  %v1427_v55 = vld [vmem:[%s3045_s5 + $0x38] sm:$0xff] }
 0x23d   :  { %v1812_v19 = vpop.eup %1811  ;;  %1679 = vst.msk [vmem:[%s3045_s5 + $0x18] sm:$0xff] %vm23_vm1, %v1555_v23  ;;  %v1561_v61 = vmul.f32 %v1810_v50, %v1560_v17  ;;  %v1395_v40 = vld [vmem:[%s3044_s4 + $0x38] sm:$0xff]  ;;  %v1443_v58 = vmul.f32 0.001953125, %v1427_v55  ;;  %v1205_v55 = vld [vmem:[%s3045_s5 + $0x60] sm:$0xff] }
 0x23e   :  { %v1567_v26 = vmul.f32 %v1812_v19, %v2746_v45  ;;  %1813 = vrsqrt.f32 %v2773_v36  ;;  %1377 = vst.msk [vmem:[%s3045_s5 + $0x40] sm:$0xff] %vm23_vm1, %v1361_v18  ;;  %v1411_v56 = vmul.f32 0.001953125, %v1395_v40  ;;  %vm1573_vm2 = vweird.f32 %v1812_v19 }
 0x23f   :  { %v1565_v35 = vsel %vm1564_vm0, %v1810_v50, %v1561_v61  ;;  %1185 = vst.msk [vmem:[%s3044_s4 + $0x40] sm:$0xff] %vm23_vm1, %v1168_v21  ;;  %vm1574_vm4 = vmor %vm1572_vm3, %vm1573_vm2  ;;  %vm1582_vm6 = vweird.f32 %v2773_v36 }
 0x240   :  { %1680 = vst.msk [vmem:[%s3045_s5 + $0x20] sm:$0xff] %vm23_vm1, %v1565_v35  ;;  %v1568_v6 = vmul.f32 %v1812_v19, %v1567_v26  ;;  %v1459_v34 = vmul.f32 %v1411_v56, %v1411_v56  ;;  %v1076_v35 = vld [vmem:[%s3044_s4 + $0x60] sm:$0xff] }
 0x241   :  { %1491 = vst.msk [vmem:[%s3044_s4 + $0x38] sm:$0xff] %vm23_vm1, %v1411_v56 }
 0x242   :  { %v1569_v60 = vmul.f32 0.5, %v1568_v6  ;;  %v1322_v27 = vpop.xlane.xlu0 %1321  ;;  %v1129_v31 = vpop.xlane.xlu2 %1128  ;;  %v1475_v25 = vsub.f32 %v1443_v58, %v1459_v34 }
 0x243   :  { %v1362_v49 = vadd.f32 %v1322_v27, %v1202_v57  ;;  %v1169_v10 = vadd.f32 %v1129_v31, %v1073_v12 }
 0x244   :  { %v1814_v7 = vpop.eup %1813  ;;  %v1570_v29 = vsub.f32 1.5, %v1569_v60  ;;  %v2811_v53 = vadd.f32 1e-05, %v1475_v25 }
 0x245   :  { %v1577_v51 = vmul.f32 %v1814_v7, %v2773_v36  ;;  %1378 = vst.msk [vmem:[%s3045_s5 + $0x48] sm:$0xff] %vm23_vm1, %v1362_v49  ;;  %v1428_v13 = vld [vmem:[%s3045_s5 + $0x40] sm:$0xff]  ;;  %vm1583_vm5 = vweird.f32 %v1814_v7 }
 0x246   :  { %v1571_v63 = vmul.f32 %v1812_v19, %v1570_v29  ;;  %v1396_v9 = vld [vmem:[%s3044_s4 + $0x40] sm:$0xff]  ;;  %1186 = vst.msk [vmem:[%s3044_s4 + $0x48] sm:$0xff] %vm23_vm1, %v1169_v10  ;;  %1815 = vrsqrt.f32 %v2811_v53  ;;  %v1444_v16 = vmul.f32 0.001953125, %v1428_v13  ;;  %vm1584_vm7 = vmor %vm1582_vm6, %vm1583_vm5  ;;  %vm1592_vm9 = vweird.f32 %v2811_v53 }
 0x247   :  { %v1578_v11 = vmul.f32 %v1814_v7, %v1577_v51  ;;  %v1412_v33 = vmul.f32 0.001953125, %v1396_v9 }
 0x248   :  { %v1575_v1 = vsel %vm1574_vm4, %v1812_v19, %v1571_v63 }
 0x249   :  { %1681 = vst.msk [vmem:[%s3045_s5 + $0x28] sm:$0xff] %vm23_vm1, %v1575_v1  ;;  %v1579_v14 = vmul.f32 0.5, %v1578_v11  ;;  %v1460_v41 = vmul.f32 %v1412_v33, %v1412_v33 }
 0x24a   :  { %1492 = vst.msk [vmem:[%s3044_s4 + $0x40] sm:$0xff] %vm23_vm1, %v1412_v33  ;;  %v1327_v20 = vpop.xlane.xlu1 %1326  ;;  %v1134_v32 = vpop.xlane.xlu0 %1133  ;;  %v1077_v33 = vld [vmem:[%s3044_s4 + $0x68] sm:$0xff] }
 0x24b   :  { %v1580_v42 = vsub.f32 1.5, %v1579_v14  ;;  %v1476_v43 = vsub.f32 %v1444_v16, %v1460_v41  ;;  %v1363_v46 = vadd.f32 %v1327_v20, %v1203_v24  ;;  %v1170_v3 = vadd.f32 %v1134_v32, %v1074_v62 }
 0x24c   :  { %v1816_v15 = vpop.eup %1815  ;;  %v1429_v28 = vld [vmem:[%s3045_s5 + $0x48] sm:$0xff] }
 0x24d   :  { %v1581_v50 = vmul.f32 %v1814_v7, %v1580_v42  ;;  %v2844_v22 = vadd.f32 1e-05, %v1476_v43  ;;  %v1397_v45 = vld [vmem:[%s3044_s4 + $0x48] sm:$0xff]  ;;  %1379 = vst.msk [vmem:[%s3045_s5 + $0x50] sm:$0xff] %vm23_vm1, %v1363_v46  ;;  %v1587_v54 = vmul.f32 %v1816_v15, %v2811_v53  ;;  %v1445_v52 = vmul.f32 0.001953125, %v1429_v28 }
 0x24e   :  { %v1413_v44 = vmul.f32 0.001953125, %v1397_v45  ;;  %1187 = vst.msk [vmem:[%s3044_s4 + $0x50] sm:$0xff] %vm23_vm1, %v1170_v3  ;;  %vm1593_vm8 = vweird.f32 %v1816_v15  ;;  %v1078_v3 = vld [vmem:[%s3044_s4 + $0x70] sm:$0xff] }
 0x24f   :  { %v1585_v37 = vsel %vm1584_vm7, %v1814_v7, %v1581_v50  ;;  %1817 = vrsqrt.f32 %v2844_v22  ;;  %v1588_v38 = vmul.f32 %v1816_v15, %v1587_v54  ;;  %vm1594_vm10 = vmor %vm1592_vm9, %vm1593_vm8  ;;  %vm1602_vm12 = vweird.f32 %v2844_v22 }
 0x250   :  { %1682 = vst.msk [vmem:[%s3045_s5 + $0x30] sm:$0xff] %vm23_vm1, %v1585_v37  ;;  %v1461_v2 = vmul.f32 %v1413_v44, %v1413_v44 }
 0x251   :  { %1493 = vst.msk [vmem:[%s3044_s4 + $0x48] sm:$0xff] %vm23_vm1, %v1413_v44  ;;  %v1589_v47 = vmul.f32 0.5, %v1588_v38 }
 0x252   :  { %v1477_v39 = vsub.f32 %v1445_v52, %v1461_v2  ;;  %v1332_v48 = vpop.xlane.xlu2 %1331  ;;  %v1139_v0 = vpop.xlane.xlu1 %1138 }
 0x253   :  { %v1364_v5 = vadd.f32 %v1332_v48, %v1204_v30  ;;  %v1171_v8 = vadd.f32 %v1139_v0, %v1075_v4  ;;  %v1590_v59 = vsub.f32 1.5, %v1589_v47  ;;  %v1206_v0 = vld [vmem:[%s3045_s5 + $0x68] sm:$0xff] }
 0x254   :  { %v1509_v17 = vadd.f32 1e-05, %v1477_v39  ;;  %v1430_v19 = vld [vmem:[%s3045_s5 + $0x50] sm:$0xff] }
 0x255   :  { %v1818_v18 = vpop.eup %1817  ;;  %v1398_v21 = vld [vmem:[%s3044_s4 + $0x50] sm:$0xff]  ;;  %1380 = vst.msk [vmem:[%s3045_s5 + $0x58] sm:$0xff] %vm23_vm1, %v1364_v5  ;;  %v1591_v23 = vmul.f32 %v1816_v15, %v1590_v59  ;;  %v1446_v56 = vmul.f32 0.001953125, %v1430_v19  ;;  %v1079_v5 = vld [vmem:[%s3044_s4 + $0x78] sm:$0xff] }
 0x256   :  { %v1597_v36 = vmul.f32 %v1818_v18, %v2844_v22  ;;  %1819 = vrsqrt.f32 %v1509_v17  ;;  %1188 = vst.msk [vmem:[%s3044_s4 + $0x58] sm:$0xff] %vm23_vm1, %v1171_v8  ;;  %v1414_v61 = vmul.f32 0.001953125, %v1398_v21  ;;  %vm1603_vm11 = vweird.f32 %v1818_v18  ;;  %v1208_v21 = vld [vmem:[%s3045_s5 + $0x78] sm:$0xff] }
 0x257   :  { %v1595_v40 = vsel %vm1594_vm10, %v1816_v15, %v1591_v23  ;;  %vm1604_vm13 = vmor %vm1602_vm12, %vm1603_vm11  ;;  %vm1612_vm15 = vweird.f32 %v1509_v17 }
 0x258   :  { %v1598_v26 = vmul.f32 %v1818_v18, %v1597_v36  ;;  %1683 = vst.msk [vmem:[%s3045_s5 + $0x38] sm:$0xff] %vm23_vm1, %v1595_v40  ;;  %v1462_v6 = vmul.f32 %v1414_v61, %v1414_v61 }
 0x259   :  { %1494 = vst.msk [vmem:[%s3044_s4 + $0x50] sm:$0xff] %vm23_vm1, %v1414_v61 }
 0x25a   :  { %v1599_v57 = vmul.f32 0.5, %v1598_v26  ;;  %v1337_v12 = vpop.xlane.xlu0 %1336  ;;  %v1144_v58 = vpop.xlane.xlu2 %1143  ;;  %v1478_v34 = vsub.f32 %v1446_v56, %v1462_v6 }
 0x25b   :  { %v1365_v60 = vadd.f32 %v1337_v12, %v1205_v55  ;;  %v1172_v27 = vadd.f32 %v1144_v58, %v1076_v35  ;;  %v1207_v12 = vld [vmem:[%s3045_s5 + $0x70] sm:$0xff] }
 0x25c   :  { %v1820_v31 = vpop.eup %1819  ;;  %v1600_v25 = vsub.f32 1.5, %v1599_v57  ;;  %v1510_v10 = vadd.f32 1e-05, %v1478_v34  ;;  %v1431_v7 = vld [vmem:[%s3045_s5 + $0x58] sm:$0xff] }
 0x25d   :  { %v1607_v49 = vmul.f32 %v1820_v31, %v1509_v17  ;;  %v1399_v29 = vld [vmem:[%s3044_s4 + $0x58] sm:$0xff]  ;;  %1381 = vst.msk [vmem:[%s3045_s5 + $0x60] sm:$0xff] %vm23_vm1, %v1365_v60  ;;  %v1447_v9 = vmul.f32 0.001953125, %v1431_v7  ;;  %vm1613_vm14 = vweird.f32 %v1820_v31 }
 0x25e   :  { %v1601_v51 = vmul.f32 %v1818_v18, %v1600_v25  ;;  %v1415_v53 = vmul.f32 0.001953125, %v1399_v29  ;;  %1189 = vst.msk [vmem:[%s3044_s4 + $0x60] sm:$0xff] %vm23_vm1, %v1172_v27  ;;  %1821 = vrsqrt.f32 %v1510_v10  ;;  %vm1614_vm0 = vmor %vm1612_vm15, %vm1613_vm14  ;;  %vm1622_vm3 = vweird.f32 %v1510_v10 }
 0x25f   :  { %v1608_v63 = vmul.f32 %v1820_v31, %v1607_v49 }
 0x260   :  { %v1605_v13 = vsel %vm1604_vm13, %v1818_v18, %v1601_v51  ;;  %v1463_v11 = vmul.f32 %v1415_v53, %v1415_v53  ;;  %1495 = vst.msk [vmem:[%s3044_s4 + $0x58] sm:$0xff] %vm23_vm1, %v1415_v53 }
 0x261   :  { %1684 = vst.msk [vmem:[%s3045_s5 + $0x40] sm:$0xff] %vm23_vm1, %v1605_v13  ;;  %v1609_v1 = vmul.f32 0.5, %v1608_v63 }
 0x262   :  { %v1479_v24 = vsub.f32 %v1447_v9, %v1463_v11  ;;  %v1149_v62 = vpop.xlane.xlu0 %1148 }
 0x263   :  { %v1610_v14 = vsub.f32 1.5, %v1609_v1  ;;  %v1173_v16 = vadd.f32 %v1149_v62, %v1077_v33 }
 0x264   :  { %v1511_v41 = vadd.f32 1e-05, %v1479_v24  ;;  %v1822_v20 = vpop.eup %1821  ;;  %v1432_v46 = vld [vmem:[%s3045_s5 + $0x60] sm:$0xff] }
 0x265   :  { %v1611_v32 = vmul.f32 %v1820_v31, %v1610_v14  ;;  %v1400_v42 = vld [vmem:[%s3044_s4 + $0x60] sm:$0xff]  ;;  %1190 = vst.msk [vmem:[%s3044_s4 + $0x68] sm:$0xff] %vm23_vm1, %v1173_v16  ;;  %v1617_v43 = vmul.f32 %v1822_v20, %v1510_v10  ;;  %v1448_v45 = vmul.f32 0.001953125, %v1432_v46  ;;  %vm1623_vm2 = vweird.f32 %v1822_v20 }
 0x266   :  { %1823 = vrsqrt.f32 %v1511_v41  ;;  %v1416_v50 = vmul.f32 0.001953125, %v1400_v42  ;;  %vm1624_vm4 = vmor %vm1622_vm3, %vm1623_vm2  ;;  %vm1632_vm6 = vweird.f32 %v1511_v41 }
 0x267   :  { %v1615_v15 = vsel %vm1614_vm0, %v1820_v31, %v1611_v32  ;;  %v1618_v22 = vmul.f32 %v1822_v20, %v1617_v43 }
 0x268   :  { %1685 = vst.msk [vmem:[%s3045_s5 + $0x48] sm:$0xff] %vm23_vm1, %v1615_v15  ;;  %v1154_v28 = vpop.xlane.xlu1 %1153  ;;  %v1464_v54 = vmul.f32 %v1416_v50, %v1416_v50 }
 0x269   :  { %1496 = vst.msk [vmem:[%s3044_s4 + $0x60] sm:$0xff] %vm23_vm1, %v1416_v50  ;;  %v1174_v44 = vadd.f32 %v1154_v28, %v1078_v3  ;;  %v1619_v37 = vmul.f32 0.5, %v1618_v22 }
 0x26a   :  { %v1480_v38 = vsub.f32 %v1448_v45, %v1464_v54 }
 0x26b   :  { %1191 = vst.msk [vmem:[%s3044_s4 + $0x70] sm:$0xff] %vm23_vm1, %v1174_v44  ;;  %v1620_v2 = vsub.f32 1.5, %v1619_v37 }
 0x26c   :  { %v1824_v52 = vpop.eup %1823  ;;  %v1401_v30 = vld [vmem:[%s3044_s4 + $0x68] sm:$0xff]  ;;  %v1512_v47 = vadd.f32 1e-05, %v1480_v38 }
 0x26d   :  { %v1627_v4 = vmul.f32 %v1824_v52, %v1511_v41  ;;  %v1417_v39 = vmul.f32 0.001953125, %v1401_v30  ;;  %v1621_v48 = vmul.f32 %v1822_v20, %v1620_v2  ;;  %vm1633_vm5 = vweird.f32 %v1824_v52 }
 0x26e   :  { %1825 = vrsqrt.f32 %v1512_v47  ;;  %vm1634_vm7 = vmor %vm1632_vm6, %vm1633_vm5  ;;  %vm1642_vm9 = vweird.f32 %v1512_v47 }
 0x26f   :  { %v1628_v8 = vmul.f32 %v1824_v52, %v1627_v4  ;;  %1497 = vst.msk [vmem:[%s3044_s4 + $0x68] sm:$0xff] %vm23_vm1, %v1417_v39  ;;  %v1625_v59 = vsel %vm1624_vm4, %v1822_v20, %v1621_v48  ;;  %v1465_v49 = vmul.f32 %v1417_v39, %v1417_v39 }
 0x270   :  { %v1342_v17 = vpop.xlane.xlu1 %1341  ;;  %v1159_v18 = vpop.xlane.xlu2 %1158  ;;  %1686 = vst.msk [vmem:[%s3045_s5 + $0x50] sm:$0xff] %vm23_vm1, %v1625_v59 }
 0x271   :  { %v1629_v23 = vmul.f32 0.5, %v1628_v8  ;;  %v1366_v36 = vadd.f32 %v1342_v17, %v1206_v0  ;;  %v1175_v19 = vadd.f32 %v1159_v18, %v1079_v5 }
 0x272   :  { %v1402_v61 = vld [vmem:[%s3044_s4 + $0x70] sm:$0xff]  ;;  %v1352_v40 = vpop.xlane.xlu0 %1351 }
 0x273   :  { %v1630_v26 = vsub.f32 1.5, %v1629_v23  ;;  %v1418_v55 = vmul.f32 0.001953125, %v1402_v61  ;;  %1382 = vst.msk [vmem:[%s3045_s5 + $0x68] sm:$0xff] %vm23_vm1, %v1366_v36  ;;  %v1368_v35 = vadd.f32 %v1352_v40, %v1208_v21 }
 0x274   :  { %1192 = vst.msk [vmem:[%s3044_s4 + $0x78] sm:$0xff] %vm23_vm1, %v1175_v19  ;;  %v1826_v56 = vpop.eup %1825 }
 0x275   :  { %v1631_v6 = vmul.f32 %v1824_v52, %v1630_v26  ;;  %1498 = vst.msk [vmem:[%s3044_s4 + $0x70] sm:$0xff] %vm23_vm1, %v1418_v55  ;;  %v1637_v57 = vmul.f32 %v1826_v56, %v1512_v47  ;;  %vm1643_vm8 = vweird.f32 %v1826_v56  ;;  %v1466_v16 = vmul.f32 %v1418_v55, %v1418_v55 }
 0x276   :  { %1384 = vst.msk [vmem:[%s3045_s5 + $0x78] sm:$0xff] %vm23_vm1, %v1368_v35  ;;  %vm1644_vm10 = vmor %vm1642_vm9, %vm1643_vm8 }
 0x277   :  { %v1635_v58 = vsel %vm1634_vm7, %v1824_v52, %v1631_v6  ;;  %v1638_v34 = vmul.f32 %v1826_v56, %v1637_v57 }
 0x278   :  { %1687 = vst.msk [vmem:[%s3045_s5 + $0x58] sm:$0xff] %vm23_vm1, %v1635_v58  ;;  %v1347_v60 = vpop.xlane.xlu2 %1346 }
 0x279   :  { %v1367_v27 = vadd.f32 %v1347_v60, %v1207_v12  ;;  %v1639_v31 = vmul.f32 0.5, %v1638_v34 }
 0x27a   :  { %v1433_v25 = vld [vmem:[%s3045_s5 + $0x68] sm:$0xff] }
 0x27b   :  { %v1449_v10 = vmul.f32 0.001953125, %v1433_v25  ;;  %v1403_v7 = vld [vmem:[%s3044_s4 + $0x78] sm:$0xff]  ;;  %1383 = vst.msk [vmem:[%s3045_s5 + $0x70] sm:$0xff] %vm23_vm1, %v1367_v27  ;;  %v1640_v29 = vsub.f32 1.5, %v1639_v31 }
 0x27c   :  { %v1419_v51 = vmul.f32 0.001953125, %v1403_v7 }
 0x27d   :  { %v1481_v53 = vsub.f32 %v1449_v10, %v1465_v49  ;;  %v1435_v63 = vld [vmem:[%s3045_s5 + $0x78] sm:$0xff]  ;;  %v1641_v13 = vmul.f32 %v1826_v56, %v1640_v29 }
 0x27e   :  { %v1467_v9 = vmul.f32 %v1419_v51, %v1419_v51  ;;  %1499 = vst.msk [vmem:[%s3044_s4 + $0x78] sm:$0xff] %vm23_vm1, %v1419_v51  ;;  %v1451_v11 = vmul.f32 0.001953125, %v1435_v63 }
 0x27f   :  { %v1513_v33 = vadd.f32 1e-05, %v1481_v53  ;;  %v1645_v1 = vsel %vm1644_vm10, %v1826_v56, %v1641_v13 }
 0x280   :  { %v1483_v24 = vsub.f32 %v1451_v11, %v1467_v9  ;;  %1688 = vst.msk [vmem:[%s3045_s5 + $0x60] sm:$0xff] %vm23_vm1, %v1645_v1 }
 0x281   :  { %1827 = vrsqrt.f32 %v1513_v33  ;;  %vm1652_vm12 = vweird.f32 %v1513_v33 }
 0x282   :  { %v1515_v62 = vadd.f32 1e-05, %v1483_v24  ;;  %v1434_v14 = vld [vmem:[%s3045_s5 + $0x70] sm:$0xff] }
 0x283   :  { %v1450_v41 = vmul.f32 0.001953125, %v1434_v14 }
 0x284   :  { %1829 = vrsqrt.f32 %v1515_v62  ;;  %vm1672_vm15 = vweird.f32 %v1515_v62 }
 0x285   :  { %v1482_v20 = vsub.f32 %v1450_v41, %v1466_v16 }
 0x287   :  { %v1828_v32 = vpop.eup %1827  ;;  %v1514_v42 = vadd.f32 1e-05, %v1482_v20 }
 0x288   :  { %v1647_v43 = vmul.f32 %v1828_v32, %v1513_v33  ;;  %vm1653_vm11 = vweird.f32 %v1828_v32 }
 0x289   :  { %1831 = vrsqrt.f32 %v1514_v42  ;;  %vm1654_vm13 = vmor %vm1652_vm12, %vm1653_vm11  ;;  %vm1662_vm3 = vweird.f32 %v1514_v42 }
 0x28a   :  { %v1830_v46 = vpop.eup %1829  ;;  %v1648_v3 = vmul.f32 %v1828_v32, %v1647_v43 }
 0x28b   :  { %v1667_v15 = vmul.f32 %v1830_v46, %v1515_v62  ;;  %vm1673_vm14 = vweird.f32 %v1830_v46 }
 0x28c   :  { %v1649_v50 = vmul.f32 0.5, %v1648_v3  ;;  %vm1674_vm0 = vmor %vm1672_vm15, %vm1673_vm14 }
 0x28d   :  { %v1668_v22 = vmul.f32 %v1830_v46, %v1667_v15 }
 0x28e   :  { %v1650_v28 = vsub.f32 1.5, %v1649_v50 }
 0x28f   :  { %v1832_v45 = vpop.eup %1831  ;;  %v1669_v54 = vmul.f32 0.5, %v1668_v22 }
 0x290   :  { %v1651_v44 = vmul.f32 %v1828_v32, %v1650_v28  ;;  %v1657_v37 = vmul.f32 %v1832_v45, %v1514_v42  ;;  %vm1663_vm2 = vweird.f32 %v1832_v45 }
 0x291   :  { %v1670_v38 = vsub.f32 1.5, %v1669_v54  ;;  %vm1664_vm4 = vmor %vm1662_vm3, %vm1663_vm2 }
 0x292   :  { %v1655_v52 = vsel %vm1654_vm13, %v1828_v32, %v1651_v44  ;;  %v1658_v2 = vmul.f32 %v1832_v45, %v1657_v37 }
 0x293   :  { %1689 = vst.msk [vmem:[%s3045_s5 + $0x68] sm:$0xff] %vm23_vm1, %v1655_v52  ;;  %v1671_v30 = vmul.f32 %v1830_v46, %v1670_v38 }
 0x294   :  { %v1659_v4 = vmul.f32 0.5, %v1658_v2 }
 0x295   :  { %v1675_v47 = vsel %vm1674_vm0, %v1830_v46, %v1671_v30 }
 0x296   :  { %1691 = vst.msk [vmem:[%s3045_s5 + $0x78] sm:$0xff] %vm23_vm1, %v1675_v47  ;;  %v1660_v39 = vsub.f32 1.5, %v1659_v4 }
 0x298   :  { %v1661_v48 = vmul.f32 %v1832_v45, %v1660_v39 }
 0x29a   :  { %v1665_v0 = vsel %vm1664_vm4, %v1832_v45, %v1661_v48 }
 0x29b   :  { %1690 = vst.msk [vmem:[%s3045_s5 + $0x70] sm:$0xff] %vm23_vm1, %v1665_v0 }

</bundles_post_ra>
